<compile_context>
chip_gen: v6e
topology: v6e:2x2x1
jax: 0.10.0
libtpu: 0.0.40
codegen_flags: <defaults>
</compile_context>

<pallas_src>
import numpy as np
import jax
import jax.numpy as jnp
from jax.experimental import pallas as pl
from jax.experimental.pallas import tpu as pltpu

DIMS = [768, 1024, 128, 64, 16, 1]   # widths of the Linear stack


def folded_mlp_kernel(x_ref, w_ref, b_ref, out_ref):
    """One grid step: out[tb, 1] = x[tb, 768] @ w_eff[768, 1] + b_eff."""
    acc = jnp.dot(x_ref[...], w_ref[...], preferred_element_type=jnp.float32)
    out_ref[...] = (acc + b_ref[0]).astype(out_ref.dtype)


def init_params(key):
    """PyTorch nn.Linear default init: U(-1/sqrt(fan_in), 1/sqrt(fan_in)).

    Weights are stored transposed as (in_features, out_features) so the
    forward pass is x @ W + b.
    """
    params = []
    for i in range(len(DIMS) - 1):
        fan_in, fan_out = DIMS[i], DIMS[i + 1]
        key, kw, kb = jax.random.split(key, 3)
        bound = 1.0 / (fan_in ** 0.5)
        w = jax.random.uniform(kw, (fan_in, fan_out), jnp.float32, -bound, bound)
        b = jax.random.uniform(kb, (1, fan_out), jnp.float32, -bound, bound)
        params.append((w, b))
    return params


def fold_params(params, dtype=jnp.float32):
    """Collapse the affine chain (Dropout = identity at inference) into one matvec.

    Done ONCE, host-side, in float64 (tighter rounding vs the layer-by-layer
    reference), then cast.  Returns (w_eff [768,1] in `dtype`, b_eff [1] f32).
    """
    ws = [np.asarray(w, dtype=np.float64) for w, _ in params]
    bs = [np.asarray(b, dtype=np.float64) for _, b in params]
    w_eff = ws[0]
    for w in ws[1:]:
        w_eff = w_eff @ w
    b_eff = bs[0]
    for w, b in zip(ws[1:], bs[1:]):
        b_eff = b_eff @ w + b
    return (jnp.asarray(w_eff, dtype=dtype),
            jnp.asarray(b_eff.reshape(-1), dtype=jnp.float32))


def mlp_forward(x, w_eff, b_eff, *, block_b=2048):
    """Forward pass via the folded Pallas kernel.

    x:      [B, 768] embeddings (f32 or bf16; bf16 halves HBM traffic).
    w_eff:  [768, 1] folded weight (same dtype as x; cast here if needed).
    b_eff:  [1] folded bias (f32, lives in SMEM).
    block_b: batch-tile rows per grid step.  Default 2048 keeps the
             double-buffered x tile (12 MiB f32 / 6 MiB bf16) inside every
             generation's default scoped VMEM while amortizing the ~0.35 us
             per-step overhead (~85% of HBM roofline).
    """
    B, D = x.shape
    assert D == DIMS[0], f"expected {DIMS[0]} input features, got {D}"

    if w_eff.dtype != x.dtype:          # tiny (768-elem) one-off cast
        w_eff = w_eff.astype(x.dtype)

    tb = B if B <= block_b else block_b
    grid = (pl.cdiv(B, tb),)
    if grid[0] > 1:
        # Only multi-step tiles must obey the (8, 128) rule; a full-batch
        # block is exempt.
        assert tb % 8 == 0, f"batch tile {tb} must be a multiple of 8"

    itemsize = jnp.dtype(x.dtype).itemsize
    bytes_accessed = (B * D * itemsize        # stream x
                      + B * 4                 # write out (f32)
                      + D * itemsize + 4)     # w_eff + b_eff (once)

    return pl.pallas_call(
        folded_mlp_kernel,
        out_shape=jax.ShapeDtypeStruct((B, DIMS[-1]), jnp.float32),
        grid_spec=pltpu.PrefetchScalarGridSpec(
            num_scalar_prefetch=0,
            grid=grid,
            in_specs=[
                # x streams through, one batch tile per grid step (pipelined).
                pl.BlockSpec((tb, DIMS[0]), lambda i: (i, 0)),
                # Folded weight: constant index_map -> fetched once, stays
                # VMEM-resident for the whole grid (~3 KiB).
                pl.BlockSpec((DIMS[0], DIMS[-1]), lambda i: (0, 0)),
                # Folded bias: single f32 scalar in SMEM.
                pl.BlockSpec(memory_space=pltpu.MemorySpace.SMEM),
            ],
            out_specs=pl.BlockSpec((tb, DIMS[-1]), lambda i: (i, 0)),
        ),
        compiler_params=pltpu.CompilerParams(
            # Batch tiles are independent.
            dimension_semantics=("parallel",),
        ),
        cost_estimate=pl.CostEstimate(
            flops=2 * B * DIMS[0],
            transcendentals=0,
            bytes_accessed=bytes_accessed,
        ),
    )(x, w_eff, b_eff)


def mlp_reference(x, params):
    """Unfolded layer-by-layer reference (Dropout layers are identity in eval)."""
    h = x
    for w, b in params:
        h = h @ w + b
    return h


if __name__ == "__main__":
    key = jax.random.PRNGKey(0)
    key, kx = jax.random.split(key)

    B = 512                      # batch of CLIP-style embeddings
    x = jax.random.normal(kx, (B, DIMS[0]), jnp.float32)

    params = init_params(key)
    # Fold ONCE, outside the per-call path (host-side, float64).
    w_eff, b_eff = fold_params(params)

    ref = mlp_reference(x, params)

    # Production-default tile (single grid step at this small demo batch).
    out = jax.block_until_ready(mlp_forward(x, w_eff, b_eff))
    assert out.shape == (B, 1)
    assert jnp.allclose(out, ref, atol=1e-3, rtol=1e-3), "kernel mismatch vs reference"

    # Also verify the multi-step, software-pipelined batch grid (grid=(2,)).
    out2 = jax.block_until_ready(mlp_forward(x, w_eff, b_eff, block_b=256))
    assert jnp.allclose(out2, ref, atol=1e-3, rtol=1e-3), "tiled kernel mismatch vs reference"

    print("KERNEL_OK")
</pallas_src>

<mosaic_0001>
module attributes {stable_mosaic.version = 11 : i64} {
  func.func @folded_mlp_kernel(%arg0: i32, %arg1: memref<512x768xf32, #tpu.memory_space<vmem>>, %arg2: memref<768x1xf32, #tpu.memory_space<vmem>>, %arg3: memref<1xf32, #tpu.memory_space<smem>>, %arg4: memref<512x1xf32, #tpu.memory_space<vmem>>) attributes {dimension_semantics = [#tpu.dimension_semantics<parallel>], iteration_bounds = array<i64: 1>, scalar_prefetch = 0 : i64, scratch_operands = 0 : i64, tpu.core_type = #tpu.core_type<tc>, window_params = [{transform_indices = @transform_0, window_bounds = array<i64: 512, 768>}, {pipeline_mode = #tpu.pipeline_mode<synchronous>, transform_indices = @transform_1, window_bounds = array<i64: 768, 1>}, {transform_indices = @transform_2, window_bounds = array<i64: 1>}, {transform_indices = @transform_3, window_bounds = array<i64: 512, 1>}]} {
    %c0 = arith.constant 0 : index
    %c0_0 = arith.constant 0 : index
    %0 = vector.load %arg1[%c0, %c0_0] : memref<512x768xf32, #tpu.memory_space<vmem>>, vector<512x768xf32>
    %c0_1 = arith.constant 0 : index
    %c0_2 = arith.constant 0 : index
    %1 = vector.load %arg2[%c0_1, %c0_2] : memref<768x1xf32, #tpu.memory_space<vmem>>, vector<768x1xf32>
    %cst = arith.constant dense<0.000000e+00> : vector<512x1xf32>
    %2 = tpu.matmul %0, %1, %cst {dimension_numbers = #tpu.dot_dimension_numbers<[1], [0], [0], [1], [0, 0, 1, 1], [], []>} : vector<512x768xf32>, vector<768x1xf32>, vector<512x1xf32> -> vector<512x1xf32>
    %c0_3 = arith.constant 0 : index
    %3 = memref.load %arg3[%c0_3] : memref<1xf32, #tpu.memory_space<smem>>
    %4 = vector.broadcast %3 : f32 to vector<512x1xf32>
    %5 = arith.addf %2, %4 : vector<512x1xf32>
    %c0_4 = arith.constant 0 : index
    %c0_5 = arith.constant 0 : index
    %6 = vector.load %arg4[%c0_4, %c0_5] : memref<512x1xf32, #tpu.memory_space<vmem>>, vector<512x1xf32>
    tpu.vector_store %arg4[%c0_4, %c0_5], %5 {strides = array<i32>} : memref<512x1xf32, #tpu.memory_space<vmem>>, vector<512x1xf32>,
    return
  }
  func.func @transform_0(%arg0: i32) -> (i32, i32) {
    %c0_i32 = arith.constant 0 : i32
    %c0_i32_0 = arith.constant 0 : i32
    return %arg0, %c0_i32 : i32, i32
  }
  func.func @transform_1(%arg0: i32) -> (i32, i32) {
    %c0_i32 = arith.constant 0 : i32
    %c0_i32_0 = arith.constant 0 : i32
    %c0_i32_1 = arith.constant 0 : i32
    return %c0_i32, %c0_i32_0 : i32, i32
  }
  func.func @transform_2(%arg0: i32) -> i32 {
    %c0_i32 = arith.constant 0 : i32
    %c0_i32_0 = arith.constant 0 : i32
    return %c0_i32 : i32
  }
  func.func @transform_3(%arg0: i32) -> (i32, i32) {
    %c0_i32 = arith.constant 0 : i32
    %c0_i32_0 = arith.constant 0 : i32
    return %arg0, %c0_i32 : i32, i32
  }
}

</mosaic_0001>

<bundles_post_ra>
// kernel: tpu_custom_call.1
= control target key start
LH: loop header
LB: loop body
LE: loop exit
PB: predicated region body
PF: predicated region fallthrough
CT: control target
= control target key end

     0   :  { %9 = vsyncpa [#allocation4], 0  ;;  %s1826_s12 = smov [#allocation3]   ;;  %s2786_s0 = inlined_call_operand.hbm [shape: f32[512,768], index: 0, kind: input, shape index: {}]   ;;  %s2787_s1 = inlined_call_operand.vmem [shape: f32[768,1], index: 1, kind: input, shape index: {}]   ;;  %s2788_s2 = inlined_call_operand.<no memory space> [shape: f32[1], index: 2, kind: input, shape index: {}]   ;;  %s2789_s3 = inlined_call_operand.vmem [shape: f32[512,1], index: 3, kind: output, shape index: {}]  }
   0x1   :  { %s15_s13 = sshll.u32 %s1826_s12, 4  ;;  %s16_s13 = int_to_ptr.vmem [resolvable:$true] %s15_s13 }
   0x2   :  { %s1812_s14 = scalar_lea.vmem %s16_s13, 49152  ;;  %p1817_p1 = scmp.lt.s32.totalorder %s16_s13, %s16_s13 }
   0x3   :  { %p1813_p0 = scmp.ne.s32.totalorder %s16_s13, %s1812_s14  ;;  %p1818_p2 = scmp.lt.s32.totalorder %s1812_s14, %s1812_s14 }
   0x5   :  { %p1819_p3 = por %p1818_p2, %p1817_p1 }
   0x7   :  { %p1820_p4 = pnand %p1819_p3, %p1813_p0 }
   0x9   :  { %1823 = shalt.err (!%p1820_p4)
}
   0xa   :  { %s1827_s15 = smov 768   ;;  %s1828_s16 = smov 48  }
   0xb   :  { %21 = dma.hbm_to_vmem [thread:$0]  %s2786_s0, 49152, %s16_s13, [#allocation4], %s1827_s15, %s1827_s15, %s1828_s16  }
   0xc   :  { %1824 = dma.done.wait [#allocation4], 49152  }
   0xd   :  { %1825 = vsyncadd [#allocation4], 4294918144  ;;  %v1829_v0 = vmov 0.0   ;;  %v428_v1 = vld [vmem:[%s2787_s1 + $0x78] sm:$0xff]  ;;  %v427_v2 = vld [vmem:[%s2787_s1 + $0x70] sm:$0xff]  ;;  %vm1666_vm0 = vcmask 7168  }
   0xe   :  { %1736 = vmatprep.subr.mxu1 %v1829_v0  ;;  %511 = vmatprep.subr.mxu0 %v1829_v0  ;;  %v426_v3 = vld [vmem:[%s2787_s1 + $0x68] sm:$0xff]  ;;  %v425_v4 = vld [vmem:[%s2787_s1 + $0x60] sm:$0xff]  ;;  %v424_v5 = vld [vmem:[%s2787_s1 + $0x58] sm:$0xff] }
   0xf   :  { %1768 = vmatpush1.msra.mxu1 %v428_v1  ;;  %512 = vmatpush1.msra.mxu0 %v428_v1  ;;  %v423_v6 = vld [vmem:[%s2787_s1 + $0x50] sm:$0xff]  ;;  %v422_v7 = vld [vmem:[%s2787_s1 + $0x48] sm:$0xff]  ;;  %v421_v8 = vld [vmem:[%s2787_s1 + $0x40] sm:$0xff] }
  0x10   :  { %1737 = vmatprep.subr.mxu1 %v1829_v0  ;;  %513 = vmatprep.subr.mxu0 %v1829_v0  ;;  %v420_v9 = vld [vmem:[%s2787_s1 + $0x38] sm:$0xff]  ;;  %v419_v10 = vld [vmem:[%s2787_s1 + $0x30] sm:$0xff]  ;;  %v418_v11 = vld [vmem:[%s2787_s1 + $0x28] sm:$0xff] }
  0x11   :  { %1769 = vmatpush1.msra.mxu1 %v427_v2  ;;  %514 = vmatpush1.msra.mxu0 %v427_v2  ;;  %v417_v12 = vld [vmem:[%s2787_s1 + $0x20] sm:$0xff]  ;;  %v416_v13 = vld [vmem:[%s2787_s1 + $0x18] sm:$0xff]  ;;  %v415_v14 = vld [vmem:[%s2787_s1 + $0x10] sm:$0xff] }
  0x12   :  { %1738 = vmatprep.subr.mxu1 %v1829_v0  ;;  %515 = vmatprep.subr.mxu0 %v1829_v0  ;;  %v414_v15 = vld [vmem:[%s2787_s1 + $0x8] sm:$0xff]  ;;  %v413_v16 = vld [vmem:[%s2787_s1] sm:$0xff]  ;;  %v444_v17 = vld [vmem:[%s2787_s1 + $0xf8] sm:$0xff] }
  0x13   :  { %1770 = vmatpush1.msra.mxu1 %v426_v3  ;;  %516 = vmatpush1.msra.mxu0 %v426_v3  ;;  %v443_v18 = vld [vmem:[%s2787_s1 + $0xf0] sm:$0xff]  ;;  %v442_v19 = vld [vmem:[%s2787_s1 + $0xe8] sm:$0xff]  ;;  %v441_v20 = vld [vmem:[%s2787_s1 + $0xe0] sm:$0xff] }
  0x14   :  { %1739 = vmatprep.subr.mxu1 %v1829_v0  ;;  %517 = vmatprep.subr.mxu0 %v1829_v0  ;;  %v440_v21 = vld [vmem:[%s2787_s1 + $0xd8] sm:$0xff]  ;;  %v439_v22 = vld [vmem:[%s2787_s1 + $0xd0] sm:$0xff]  ;;  %v438_v23 = vld [vmem:[%s2787_s1 + $0xc8] sm:$0xff] }
  0x15   :  { %1771 = vmatpush1.msra.mxu1 %v425_v4  ;;  %518 = vmatpush1.msra.mxu0 %v425_v4  ;;  %v437_v24 = vld [vmem:[%s2787_s1 + $0xc0] sm:$0xff]  ;;  %v436_v25 = vld [vmem:[%s2787_s1 + $0xb8] sm:$0xff]  ;;  %v435_v26 = vld [vmem:[%s2787_s1 + $0xb0] sm:$0xff] }
  0x16   :  { %1740 = vmatprep.subr.mxu1 %v1829_v0  ;;  %519 = vmatprep.subr.mxu0 %v1829_v0  ;;  %v434_v27 = vld [vmem:[%s2787_s1 + $0xa8] sm:$0xff]  ;;  %v433_v28 = vld [vmem:[%s2787_s1 + $0xa0] sm:$0xff]  ;;  %v432_v29 = vld [vmem:[%s2787_s1 + $0x98] sm:$0xff] }
  0x17   :  { %1772 = vmatpush1.msra.mxu1 %v424_v5  ;;  %520 = vmatpush1.msra.mxu0 %v424_v5  ;;  %v431_v30 = vld [vmem:[%s2787_s1 + $0x90] sm:$0xff]  ;;  %v430_v31 = vld [vmem:[%s2787_s1 + $0x88] sm:$0xff]  ;;  %v429_v32 = vld [vmem:[%s2787_s1 + $0x80] sm:$0xff] }
  0x18   :  { %1741 = vmatprep.subr.mxu1 %v1829_v0  ;;  %521 = vmatprep.subr.mxu0 %v1829_v0  ;;  %v222_v33 = vld [vmem:[#allocation3 + $0x608] sm:$0xff]  ;;  %v221_v35 = vld [vmem:[#allocation3 + $0x600] sm:$0xff]  ;;  %v460_v37 = vld [vmem:[%s2787_s1 + $0x178] sm:$0xff] }
  0x19   :  { %1773 = vmatpush1.msra.mxu1 %v423_v6  ;;  %522 = vmatpush1.msra.mxu0 %v423_v6  ;;  %v30_v34 = vld [vmem:[#allocation3 + $0x8] sm:$0xff]  ;;  %v29_v36 = vld [vmem:[#allocation3] sm:$0xff]  ;;  %v228_v38 = vld [vmem:[#allocation3 + $0x638] sm:$0xff] }
  0x1a   :  { %1742 = vmatprep.subr.mxu1 %v1829_v0  ;;  %523 = vmatprep.subr.mxu0 %v1829_v0  ;;  %v492_v39 = vld [vmem:[%s2787_s1 + $0x278] sm:$0xff]  ;;  %v227_v41 = vld [vmem:[#allocation3 + $0x630] sm:$0xff]  ;;  %v234_v44 = vld [vmem:[#allocation3 + $0x668] sm:$0xff] }
  0x1b   :  { %1774 = vmatpush1.msra.mxu1 %v422_v7  ;;  %524 = vmatpush1.msra.mxu0 %v422_v7  ;;  %v36_v40 = vld [vmem:[#allocation3 + $0x38] sm:$0xff]  ;;  %v35_v42 = vld [vmem:[#allocation3 + $0x30] sm:$0xff]  ;;  %v42_v46 = vld [vmem:[#allocation3 + $0x68] sm:$0xff] }
  0x1c   :  { %1743 = vmatprep.subr.mxu1 %v1829_v0  ;;  %525 = vmatprep.subr.mxu0 %v1829_v0  ;;  %v459_v43 = vld [vmem:[%s2787_s1 + $0x170] sm:$0xff]  ;;  %v233_v47 = vld [vmem:[#allocation3 + $0x660] sm:$0xff]  ;;  %v458_v49 = vld [vmem:[%s2787_s1 + $0x168] sm:$0xff] }
  0x1d   :  { %1775 = vmatpush1.msra.mxu1 %v421_v8  ;;  %526 = vmatpush1.msra.mxu0 %v421_v8  ;;  %v491_v45 = vld [vmem:[%s2787_s1 + $0x270] sm:$0xff]  ;;  %v41_v48 = vld [vmem:[#allocation3 + $0x60] sm:$0xff]  ;;  %v240_v50 = vld [vmem:[#allocation3 + $0x698] sm:$0xff] }
  0x1e   :  { %1744 = vmatprep.subr.mxu1 %v1829_v0  ;;  %527 = vmatprep.subr.mxu0 %v1829_v0  ;;  %v490_v51 = vld [vmem:[%s2787_s1 + $0x268] sm:$0xff]  ;;  %v48_v52 = vld [vmem:[#allocation3 + $0x98] sm:$0xff]  ;;  %v239_v53 = vld [vmem:[#allocation3 + $0x690] sm:$0xff] }
  0x1f   :  { %1776 = vmatpush1.msra.mxu1 %v420_v9  ;;  %528 = vmatpush1.msra.mxu0 %v420_v9  ;;  %v47_v54 = vld [vmem:[#allocation3 + $0x90] sm:$0xff]  ;;  %v457_v55 = vld [vmem:[%s2787_s1 + $0x160] sm:$0xff]  ;;  %v246_v56 = vld [vmem:[#allocation3 + $0x6c8] sm:$0xff] }
  0x20   :  { %1745 = vmatprep.subr.mxu1 %v1829_v0  ;;  %529 = vmatprep.subr.mxu0 %v1829_v0  ;;  %v489_v57 = vld [vmem:[%s2787_s1 + $0x260] sm:$0xff]  ;;  %v54_v58 = vld [vmem:[#allocation3 + $0xc8] sm:$0xff]  ;;  %v456_v61 = vld [vmem:[%s2787_s1 + $0x158] sm:$0xff] }
  0x21   :  { %1777 = vmatpush1.msra.mxu1 %v419_v10  ;;  %530 = vmatpush1.msra.mxu0 %v419_v10  ;;  %v245_v59 = vld [vmem:[#allocation3 + $0x6c0] sm:$0xff]  ;;  %v252_v62 = vld [vmem:[#allocation3 + $0x6f8] sm:$0xff]  ;;  %v251_v2 = vld [vmem:[#allocation3 + $0x6f0] sm:$0xff] }
  0x22   :  { %1746 = vmatprep.subr.mxu1 %v1829_v0  ;;  %531 = vmatprep.subr.mxu0 %v1829_v0  ;;  %v53_v60 = vld [vmem:[#allocation3 + $0xc0] sm:$0xff]  ;;  %v488_v63 = vld [vmem:[%s2787_s1 + $0x258] sm:$0xff]  ;;  %v59_v3 = vld [vmem:[#allocation3 + $0xf0] sm:$0xff] }
  0x23   :  { %1778 = vmatpush1.msra.mxu1 %v418_v11  ;;  %532 = vmatpush1.msra.mxu0 %v418_v11  ;;  %v60_v1 = vld [vmem:[#allocation3 + $0xf8] sm:$0xff]  ;;  %v455_v4 = vld [vmem:[%s2787_s1 + $0x150] sm:$0xff]  ;;  %v258_v5 = vld [vmem:[#allocation3 + $0x728] sm:$0xff] }
  0x24   :  { %1747 = vmatprep.subr.mxu1 %v1829_v0  ;;  %533 = vmatprep.subr.mxu0 %v1829_v0  ;;  %v487_v6 = vld [vmem:[%s2787_s1 + $0x250] sm:$0xff]  ;;  %v66_v7 = vld [vmem:[#allocation3 + $0x128] sm:$0xff]  ;;  %v257_v8 = vld [vmem:[#allocation3 + $0x720] sm:$0xff] }
  0x25   :  { %1779 = vmatpush1.msra.mxu1 %v417_v12  ;;  %534 = vmatpush1.msra.mxu0 %v417_v12  ;;  %v65_v9 = vld [vmem:[#allocation3 + $0x120] sm:$0xff]  ;;  %v454_v10 = vld [vmem:[%s2787_s1 + $0x148] sm:$0xff]  ;;  %v264_v11 = vld [vmem:[#allocation3 + $0x758] sm:$0xff] }
  0x26   :  { %1748 = vmatprep.subr.mxu1 %v1829_v0  ;;  %535 = vmatprep.subr.mxu0 %v1829_v0  ;;  %v486_v12 = vld [vmem:[%s2787_s1 + $0x248] sm:$0xff] }
  0x27   :  { %1780 = vmatpush1.msra.mxu1 %v416_v13  ;;  %536 = vmatpush1.msra.mxu0 %v416_v13  ;;  %v72_v13 = vld [vmem:[#allocation3 + $0x158] sm:$0xff] }
  0x28   :  { %1749 = vmatprep.subr.mxu1 %v1829_v0  ;;  %537 = vmatprep.subr.mxu0 %v1829_v0 }
  0x29   :  { %1781 = vmatpush1.msra.mxu1 %v415_v14  ;;  %538 = vmatpush1.msra.mxu0 %v415_v14  ;;  %v263_v14 = vld [vmem:[#allocation3 + $0x750] sm:$0xff] }
  0x2a   :  { %1750 = vmatprep.subr.mxu1 %v1829_v0  ;;  %539 = vmatprep.subr.mxu0 %v1829_v0 }
  0x2b   :  { %1782 = vmatpush1.msra.mxu1 %v414_v15  ;;  %540 = vmatpush1.msra.mxu0 %v414_v15  ;;  %v71_v15 = vld [vmem:[#allocation3 + $0x150] sm:$0xff] }
  0x2c   :  { %1751 = vmatprep.subr.mxu1 %v1829_v0  ;;  %541 = vmatprep.subr.mxu0 %v1829_v0 }
  0x2d   :  { %1783 = vmatpush1.msra.mxu1 %v413_v16  ;;  %542 = vmatpush1.msra.mxu0 %v413_v16  ;;  %v453_v16 = vld [vmem:[%s2787_s1 + $0x140] sm:$0xff] }
  0x2e   :  { %1752 = vmatprep.subr.mxu1 %v1829_v0  ;;  %543 = vmatprep.subr.mxu0 %v1829_v0 }
  0x2f   :  { %1784 = vmatpush2.msra.mxu1 %v444_v17  ;;  %544 = vmatpush2.msra.mxu0 %v444_v17  ;;  %v270_v17 = vld [vmem:[#allocation3 + $0x788] sm:$0xff] }
  0x30   :  { %1753 = vmatprep.subr.mxu1 %v1829_v0  ;;  %545 = vmatprep.subr.mxu0 %v1829_v0 }
  0x31   :  { %1785 = vmatpush2.msra.mxu1 %v443_v18  ;;  %546 = vmatpush2.msra.mxu0 %v443_v18  ;;  %v485_v18 = vld [vmem:[%s2787_s1 + $0x240] sm:$0xff] }
  0x32   :  { %1754 = vmatprep.subr.mxu1 %v1829_v0  ;;  %547 = vmatprep.subr.mxu0 %v1829_v0 }
  0x33   :  { %1786 = vmatpush2.msra.mxu1 %v442_v19  ;;  %548 = vmatpush2.msra.mxu0 %v442_v19  ;;  %v78_v19 = vld [vmem:[#allocation3 + $0x188] sm:$0xff] }
  0x34   :  { %1755 = vmatprep.subr.mxu1 %v1829_v0  ;;  %549 = vmatprep.subr.mxu0 %v1829_v0 }
  0x35   :  { %1787 = vmatpush2.msra.mxu1 %v441_v20  ;;  %550 = vmatpush2.msra.mxu0 %v441_v20  ;;  %v269_v20 = vld [vmem:[#allocation3 + $0x780] sm:$0xff] }
  0x36   :  { %1756 = vmatprep.subr.mxu1 %v1829_v0  ;;  %551 = vmatprep.subr.mxu0 %v1829_v0 }
  0x37   :  { %1788 = vmatpush2.msra.mxu1 %v440_v21  ;;  %552 = vmatpush2.msra.mxu0 %v440_v21  ;;  %v77_v21 = vld [vmem:[#allocation3 + $0x180] sm:$0xff] }
  0x38   :  { %1757 = vmatprep.subr.mxu1 %v1829_v0  ;;  %553 = vmatprep.subr.mxu0 %v1829_v0 }
  0x39   :  { %1789 = vmatpush2.msra.mxu1 %v439_v22  ;;  %554 = vmatpush2.msra.mxu0 %v439_v22  ;;  %v452_v22 = vld [vmem:[%s2787_s1 + $0x138] sm:$0xff] }
  0x3a   :  { %1758 = vmatprep.subr.mxu1 %v1829_v0  ;;  %555 = vmatprep.subr.mxu0 %v1829_v0 }
  0x3b   :  { %1790 = vmatpush2.msra.mxu1 %v438_v23  ;;  %556 = vmatpush2.msra.mxu0 %v438_v23  ;;  %v276_v23 = vld [vmem:[#allocation3 + $0x7b8] sm:$0xff] }
  0x3c   :  { %1759 = vmatprep.subr.mxu1 %v1829_v0  ;;  %557 = vmatprep.subr.mxu0 %v1829_v0 }
  0x3d   :  { %1791 = vmatpush2.msra.mxu1 %v437_v24  ;;  %558 = vmatpush2.msra.mxu0 %v437_v24  ;;  %v484_v24 = vld [vmem:[%s2787_s1 + $0x238] sm:$0xff] }
  0x3e   :  { %1760 = vmatprep.subr.mxu1 %v1829_v0  ;;  %559 = vmatprep.subr.mxu0 %v1829_v0 }
  0x3f   :  { %1792 = vmatpush2.msra.mxu1 %v436_v25  ;;  %560 = vmatpush2.msra.mxu0 %v436_v25  ;;  %v84_v25 = vld [vmem:[#allocation3 + $0x1b8] sm:$0xff] }
  0x40   :  { %1761 = vmatprep.subr.mxu1 %v1829_v0  ;;  %561 = vmatprep.subr.mxu0 %v1829_v0 }
  0x41   :  { %1793 = vmatpush2.msra.mxu1 %v435_v26  ;;  %562 = vmatpush2.msra.mxu0 %v435_v26  ;;  %v275_v26 = vld [vmem:[#allocation3 + $0x7b0] sm:$0xff] }
  0x42   :  { %1762 = vmatprep.subr.mxu1 %v1829_v0  ;;  %563 = vmatprep.subr.mxu0 %v1829_v0 }
  0x43   :  { %1794 = vmatpush2.msra.mxu1 %v434_v27  ;;  %564 = vmatpush2.msra.mxu0 %v434_v27  ;;  %v83_v27 = vld [vmem:[#allocation3 + $0x1b0] sm:$0xff] }
  0x44   :  { %1763 = vmatprep.subr.mxu1 %v1829_v0  ;;  %565 = vmatprep.subr.mxu0 %v1829_v0 }
  0x45   :  { %1795 = vmatpush2.msra.mxu1 %v433_v28  ;;  %566 = vmatpush2.msra.mxu0 %v433_v28  ;;  %v451_v28 = vld [vmem:[%s2787_s1 + $0x130] sm:$0xff] }
  0x46   :  { %1764 = vmatprep.subr.mxu1 %v1829_v0  ;;  %567 = vmatprep.subr.mxu0 %v1829_v0 }
  0x47   :  { %1796 = vmatpush2.msra.mxu1 %v432_v29  ;;  %568 = vmatpush2.msra.mxu0 %v432_v29  ;;  %v282_v29 = vld [vmem:[#allocation3 + $0x7e8] sm:$0xff] }
  0x48   :  { %1765 = vmatprep.subr.mxu1 %v1829_v0  ;;  %569 = vmatprep.subr.mxu0 %v1829_v0 }
  0x49   :  { %1797 = vmatpush2.msra.mxu1 %v431_v30  ;;  %570 = vmatpush2.msra.mxu0 %v431_v30  ;;  %v483_v30 = vld [vmem:[%s2787_s1 + $0x230] sm:$0xff] }
  0x4a   :  { %1766 = vmatprep.subr.mxu1 %v1829_v0  ;;  %571 = vmatprep.subr.mxu0 %v1829_v0 }
  0x4b   :  { %1798 = vmatpush2.msra.mxu1 %v430_v31  ;;  %572 = vmatpush2.msra.mxu0 %v430_v31  ;;  %v90_v31 = vld [vmem:[#allocation3 + $0x1e8] sm:$0xff] }
  0x4c   :  { %1767 = vmatprep.subr.mxu1 %v1829_v0  ;;  %573 = vmatprep.subr.mxu0 %v1829_v0 }
  0x4d   :  { %1799 = vmatpush2.msra.mxu1 %v429_v32  ;;  %735 = vmatprep.mubr.f32.mxu1 %v222_v33  ;;  %v89_v33 = vld [vmem:[#allocation3 + $0x1e0] sm:$0xff] }
  0x4e   :  { %574 = vmatpush2.msra.mxu0 %v429_v32  ;;  %575 = vmatprep.mubr.f32.mxu0 %v30_v34  ;;  %v281_v32 = vld [vmem:[#allocation3 + $0x7e0] sm:$0xff]  ;;  %v450_v34 = vld [vmem:[%s2787_s1 + $0x128] sm:$0xff] }
  0x4f   :  { %736 = vmatmul.mubr.f32.vlgmr.msra.gmra.mxu1 %v221_v35  ;;  %896 = vmatprep.subr.mxu1 %v1829_v0  ;;  %v288_v35 = vld [vmem:[#allocation3 + $0x818] sm:$0xff] }
  0x50   :  { %576 = vmatmul.mubr.f32.vlgmr.msra.gmra.mxu0 %v29_v36  ;;  %897 = vmatpush1.msra.mxu1 %v460_v37  ;;  %v482_v36 = vld [vmem:[%s2787_s1 + $0x228] sm:$0xff]  ;;  %v96_v37 = vld [vmem:[#allocation3 + $0x218] sm:$0xff] }
  0x51   :  { %1281 = vmatprep.subr.mxu0 %v1829_v0  ;;  %740 = vmatprep.mubr.f32.mxu1 %v228_v38  ;;  %v287_v38 = vld [vmem:[#allocation3 + $0x810] sm:$0xff] }
  0x52   :  { %1282 = vmatpush1.msra.mxu0 %v492_v39  ;;  %580 = vmatprep.mubr.f32.mxu0 %v36_v40  ;;  %v95_v39 = vld [vmem:[#allocation3 + $0x210] sm:$0xff]  ;;  %v449_v40 = vld [vmem:[%s2787_s1 + $0x120] sm:$0xff] }
  0x53   :  { %741 = vmatmul.mubr.f32.gmra.mxu1 %v227_v41  ;;  %898 = vmatprep.subr.mxu1 %v1829_v0  ;;  %v294_v41 = vld [vmem:[#allocation3 + $0x848] sm:$0xff] }
  0x54   :  { %581 = vmatmul.mubr.f32.gmra.mxu0 %v35_v42  ;;  %899 = vmatpush1.msra.mxu1 %v459_v43  ;;  %v481_v42 = vld [vmem:[%s2787_s1 + $0x220] sm:$0xff]  ;;  %v102_v43 = vld [vmem:[#allocation3 + $0x248] sm:$0xff] }
  0x55   :  { %1283 = vmatprep.subr.mxu0 %v1829_v0  ;;  %745 = vmatprep.mubr.f32.mxu1 %v234_v44  ;;  %v293_v44 = vld [vmem:[#allocation3 + $0x840] sm:$0xff] }
  0x56   :  { %1284 = vmatpush1.msra.mxu0 %v491_v45  ;;  %585 = vmatprep.mubr.f32.mxu0 %v42_v46  ;;  %v101_v45 = vld [vmem:[#allocation3 + $0x240] sm:$0xff]  ;;  %v448_v46 = vld [vmem:[%s2787_s1 + $0x118] sm:$0xff] }
  0x57   :  { %746 = vmatmul.mubr.f32.gmra.mxu1 %v233_v47  ;;  %900 = vmatprep.subr.mxu1 %v1829_v0  ;;  %v300_v47 = vld [vmem:[#allocation3 + $0x878] sm:$0xff] }
  0x58   :  { %586 = vmatmul.mubr.f32.gmra.mxu0 %v41_v48  ;;  %901 = vmatpush1.msra.mxu1 %v458_v49  ;;  %v480_v48 = vld [vmem:[%s2787_s1 + $0x218] sm:$0xff] }
  0x59   :  { %1285 = vmatprep.subr.mxu0 %v1829_v0  ;;  %750 = vmatprep.mubr.f32.mxu1 %v240_v50  ;;  %v108_v49 = vld [vmem:[#allocation3 + $0x278] sm:$0xff]  ;;  %v299_v50 = vld [vmem:[#allocation3 + $0x870] sm:$0xff] }
  0x5a   :  { %1286 = vmatpush1.msra.mxu0 %v490_v51  ;;  %590 = vmatprep.mubr.f32.mxu0 %v48_v52  ;;  %v107_v51 = vld [vmem:[#allocation3 + $0x270] sm:$0xff] }
  0x5b   :  { %751 = vmatmul.mubr.f32.gmra.mxu1 %v239_v53  ;;  %902 = vmatprep.subr.mxu1 %v1829_v0  ;;  %v447_v52 = vld [vmem:[%s2787_s1 + $0x110] sm:$0xff]  ;;  %v306_v53 = vld [vmem:[#allocation3 + $0x8a8] sm:$0xff] }
  0x5c   :  { %591 = vmatmul.mubr.f32.gmra.mxu0 %v47_v54  ;;  %903 = vmatpush1.msra.mxu1 %v457_v55  ;;  %v479_v54 = vld [vmem:[%s2787_s1 + $0x210] sm:$0xff]  ;;  %v114_v55 = vld [vmem:[#allocation3 + $0x2a8] sm:$0xff] }
  0x5d   :  { %1287 = vmatprep.subr.mxu0 %v1829_v0  ;;  %755 = vmatprep.mubr.f32.mxu1 %v246_v56  ;;  %v305_v56 = vld [vmem:[#allocation3 + $0x8a0] sm:$0xff] }
  0x5e   :  { %1288 = vmatpush1.msra.mxu0 %v489_v57  ;;  %595 = vmatprep.mubr.f32.mxu0 %v54_v58  ;;  %v113_v57 = vld [vmem:[#allocation3 + $0x2a0] sm:$0xff]  ;;  %v446_v58 = vld [vmem:[%s2787_s1 + $0x108] sm:$0xff] }
  0x5f   :  { %756 = vmatmul.mubr.f32.gmra.mxu1 %v245_v59  ;;  %904 = vmatprep.subr.mxu1 %v1829_v0  ;;  %v312_v59 = vld [vmem:[#allocation3 + $0x8d8] sm:$0xff] }
  0x60   :  { %596 = vmatmul.mubr.f32.gmra.mxu0 %v53_v60  ;;  %905 = vmatpush1.msra.mxu1 %v456_v61  ;;  %v478_v60 = vld [vmem:[%s2787_s1 + $0x208] sm:$0xff]  ;;  %v120_v61 = vld [vmem:[#allocation3 + $0x2d8] sm:$0xff] }
  0x61   :  { %1289 = vmatprep.subr.mxu0 %v1829_v0  ;;  %760 = vmatprep.mubr.f32.mxu1 %v252_v62  ;;  %v311_v62 = vld [vmem:[#allocation3 + $0x8d0] sm:$0xff] }
  0x62   :  { %1290 = vmatpush1.msra.mxu0 %v488_v63  ;;  %600 = vmatprep.mubr.f32.mxu0 %v60_v1  ;;  %v119_v63 = vld [vmem:[#allocation3 + $0x2d0] sm:$0xff]  ;;  %v445_v1 = vld [vmem:[%s2787_s1 + $0x100] sm:$0xff] }
  0x63   :  { %761 = vmatmul.mubr.f32.gmra.mxu1 %v251_v2  ;;  %906 = vmatprep.subr.mxu1 %v1829_v0  ;;  %v318_v2 = vld [vmem:[#allocation3 + $0x908] sm:$0xff] }
  0x64   :  { %601 = vmatmul.mubr.f32.gmra.mxu0 %v59_v3  ;;  %907 = vmatpush1.msra.mxu1 %v455_v4  ;;  %v477_v3 = vld [vmem:[%s2787_s1 + $0x200] sm:$0xff]  ;;  %v126_v4 = vld [vmem:[#allocation3 + $0x308] sm:$0xff] }
  0x65   :  { %1291 = vmatprep.subr.mxu0 %v1829_v0  ;;  %765 = vmatprep.mubr.f32.mxu1 %v258_v5  ;;  %v317_v5 = vld [vmem:[#allocation3 + $0x900] sm:$0xff] }
  0x66   :  { %1292 = vmatpush1.msra.mxu0 %v487_v6  ;;  %605 = vmatprep.mubr.f32.mxu0 %v66_v7  ;;  %v125_v6 = vld [vmem:[#allocation3 + $0x300] sm:$0xff]  ;;  %v476_v7 = vld [vmem:[%s2787_s1 + $0x1f8] sm:$0xff] }
  0x67   :  { %766 = vmatmul.mubr.f32.gmra.mxu1 %v257_v8  ;;  %908 = vmatprep.subr.mxu1 %v1829_v0  ;;  %v324_v8 = vld [vmem:[#allocation3 + $0x938] sm:$0xff] }
  0x68   :  { %606 = vmatmul.mubr.f32.gmra.mxu0 %v65_v9  ;;  %909 = vmatpush1.msra.mxu1 %v454_v10  ;;  %v508_v9 = vld [vmem:[%s2787_s1 + $0x2f8] sm:$0xff] }
  0x69   :  { %1293 = vmatprep.subr.mxu0 %v1829_v0  ;;  %770 = vmatprep.mubr.f32.mxu1 %v264_v11  ;;  %v132_v10 = vld [vmem:[#allocation3 + $0x338] sm:$0xff]  ;;  %v323_v11 = vld [vmem:[#allocation3 + $0x930] sm:$0xff] }
  0x6a   :  { %1294 = vmatpush1.msra.mxu0 %v486_v12  ;;  %610 = vmatprep.mubr.f32.mxu0 %v72_v13  ;;  %v131_v12 = vld [vmem:[#allocation3 + $0x330] sm:$0xff] }
  0x6b   :  { %771 = vmatmul.mubr.f32.gmra.mxu1 %v263_v14  ;;  %910 = vmatprep.subr.mxu1 %v1829_v0  ;;  %v475_v13 = vld [vmem:[%s2787_s1 + $0x1f0] sm:$0xff]  ;;  %v330_v14 = vld [vmem:[#allocation3 + $0x968] sm:$0xff] }
  0x6c   :  { %611 = vmatmul.mubr.f32.gmra.mxu0 %v71_v15  ;;  %911 = vmatpush1.msra.mxu1 %v453_v16  ;;  %v507_v15 = vld [vmem:[%s2787_s1 + $0x2f0] sm:$0xff]  ;;  %v138_v16 = vld [vmem:[#allocation3 + $0x368] sm:$0xff] }
  0x6d   :  { %1295 = vmatprep.subr.mxu0 %v1829_v0  ;;  %775 = vmatprep.mubr.f32.mxu1 %v270_v17  ;;  %v329_v17 = vld [vmem:[#allocation3 + $0x960] sm:$0xff] }
  0x6e   :  { %1296 = vmatpush1.msra.mxu0 %v485_v18  ;;  %615 = vmatprep.mubr.f32.mxu0 %v78_v19  ;;  %v137_v18 = vld [vmem:[#allocation3 + $0x360] sm:$0xff]  ;;  %v474_v19 = vld [vmem:[%s2787_s1 + $0x1e8] sm:$0xff] }
  0x6f   :  { %776 = vmatmul.mubr.f32.gmra.mxu1 %v269_v20  ;;  %912 = vmatprep.subr.mxu1 %v1829_v0  ;;  %v336_v20 = vld [vmem:[#allocation3 + $0x998] sm:$0xff] }
  0x70   :  { %616 = vmatmul.mubr.f32.gmra.mxu0 %v77_v21  ;;  %913 = vmatpush1.msra.mxu1 %v452_v22  ;;  %v506_v21 = vld [vmem:[%s2787_s1 + $0x2e8] sm:$0xff]  ;;  %v144_v22 = vld [vmem:[#allocation3 + $0x398] sm:$0xff] }
  0x71   :  { %1297 = vmatprep.subr.mxu0 %v1829_v0  ;;  %780 = vmatprep.mubr.f32.mxu1 %v276_v23  ;;  %v335_v23 = vld [vmem:[#allocation3 + $0x990] sm:$0xff] }
  0x72   :  { %1298 = vmatpush1.msra.mxu0 %v484_v24  ;;  %620 = vmatprep.mubr.f32.mxu0 %v84_v25  ;;  %v143_v24 = vld [vmem:[#allocation3 + $0x390] sm:$0xff]  ;;  %v473_v25 = vld [vmem:[%s2787_s1 + $0x1e0] sm:$0xff] }
  0x73   :  { %781 = vmatmul.mubr.f32.gmra.mxu1 %v275_v26  ;;  %914 = vmatprep.subr.mxu1 %v1829_v0  ;;  %v342_v26 = vld [vmem:[#allocation3 + $0x9c8] sm:$0xff] }
  0x74   :  { %621 = vmatmul.mubr.f32.gmra.mxu0 %v83_v27  ;;  %915 = vmatpush1.msra.mxu1 %v451_v28  ;;  %v505_v27 = vld [vmem:[%s2787_s1 + $0x2e0] sm:$0xff]  ;;  %v150_v28 = vld [vmem:[#allocation3 + $0x3c8] sm:$0xff] }
  0x75   :  { %1299 = vmatprep.subr.mxu0 %v1829_v0  ;;  %785 = vmatprep.mubr.f32.mxu1 %v282_v29  ;;  %v341_v29 = vld [vmem:[#allocation3 + $0x9c0] sm:$0xff] }
  0x76   :  { %1300 = vmatpush1.msra.mxu0 %v483_v30  ;;  %625 = vmatprep.mubr.f32.mxu0 %v90_v31  ;;  %v149_v30 = vld [vmem:[#allocation3 + $0x3c0] sm:$0xff]  ;;  %v472_v31 = vld [vmem:[%s2787_s1 + $0x1d8] sm:$0xff] }
  0x77   :  { %786 = vmatmul.mubr.f32.gmra.mxu1 %v281_v32  ;;  %916 = vmatprep.subr.mxu1 %v1829_v0  ;;  %v348_v32 = vld [vmem:[#allocation3 + $0x9f8] sm:$0xff] }
  0x78   :  { %626 = vmatmul.mubr.f32.gmra.mxu0 %v89_v33  ;;  %917 = vmatpush1.msra.mxu1 %v450_v34  ;;  %v504_v33 = vld [vmem:[%s2787_s1 + $0x2d8] sm:$0xff] }
  0x79   :  { %1301 = vmatprep.subr.mxu0 %v1829_v0  ;;  %790 = vmatprep.mubr.f32.mxu1 %v288_v35  ;;  %v156_v34 = vld [vmem:[#allocation3 + $0x3f8] sm:$0xff]  ;;  %v347_v35 = vld [vmem:[#allocation3 + $0x9f0] sm:$0xff] }
  0x7a   :  { %1302 = vmatpush1.msra.mxu0 %v482_v36  ;;  %630 = vmatprep.mubr.f32.mxu0 %v96_v37  ;;  %v155_v36 = vld [vmem:[#allocation3 + $0x3f0] sm:$0xff] }
  0x7b   :  { %791 = vmatmul.mubr.f32.gmra.mxu1 %v287_v38  ;;  %918 = vmatprep.subr.mxu1 %v1829_v0  ;;  %v471_v37 = vld [vmem:[%s2787_s1 + $0x1d0] sm:$0xff]  ;;  %v354_v38 = vld [vmem:[#allocation3 + $0xa28] sm:$0xff] }
  0x7c   :  { %631 = vmatmul.mubr.f32.gmra.mxu0 %v95_v39  ;;  %919 = vmatpush1.msra.mxu1 %v449_v40  ;;  %v503_v39 = vld [vmem:[%s2787_s1 + $0x2d0] sm:$0xff]  ;;  %v162_v40 = vld [vmem:[#allocation3 + $0x428] sm:$0xff] }
  0x7d   :  { %1303 = vmatprep.subr.mxu0 %v1829_v0  ;;  %795 = vmatprep.mubr.f32.mxu1 %v294_v41  ;;  %v353_v41 = vld [vmem:[#allocation3 + $0xa20] sm:$0xff] }
  0x7e   :  { %1304 = vmatpush1.msra.mxu0 %v481_v42  ;;  %635 = vmatprep.mubr.f32.mxu0 %v102_v43  ;;  %v161_v42 = vld [vmem:[#allocation3 + $0x420] sm:$0xff]  ;;  %v470_v43 = vld [vmem:[%s2787_s1 + $0x1c8] sm:$0xff] }
  0x7f   :  { %796 = vmatmul.mubr.f32.gmra.mxu1 %v293_v44  ;;  %920 = vmatprep.subr.mxu1 %v1829_v0  ;;  %v360_v44 = vld [vmem:[#allocation3 + $0xa58] sm:$0xff] }
  0x80   :  { %636 = vmatmul.mubr.f32.gmra.mxu0 %v101_v45  ;;  %921 = vmatpush1.msra.mxu1 %v448_v46  ;;  %v502_v45 = vld [vmem:[%s2787_s1 + $0x2c8] sm:$0xff]  ;;  %v168_v46 = vld [vmem:[#allocation3 + $0x458] sm:$0xff] }
  0x81   :  { %1305 = vmatprep.subr.mxu0 %v1829_v0  ;;  %800 = vmatprep.mubr.f32.mxu1 %v300_v47  ;;  %v359_v47 = vld [vmem:[#allocation3 + $0xa50] sm:$0xff] }
  0x82   :  { %1306 = vmatpush1.msra.mxu0 %v480_v48  ;;  %640 = vmatprep.mubr.f32.mxu0 %v108_v49  ;;  %v167_v48 = vld [vmem:[#allocation3 + $0x450] sm:$0xff]  ;;  %v469_v49 = vld [vmem:[%s2787_s1 + $0x1c0] sm:$0xff] }
  0x83   :  { %801 = vmatmul.mubr.f32.gmra.mxu1 %v299_v50  ;;  %922 = vmatprep.subr.mxu1 %v1829_v0  ;;  %v366_v50 = vld [vmem:[#allocation3 + $0xa88] sm:$0xff] }
  0x84   :  { %641 = vmatmul.mubr.f32.gmra.mxu0 %v107_v51  ;;  %923 = vmatpush1.msra.mxu1 %v447_v52  ;;  %v501_v51 = vld [vmem:[%s2787_s1 + $0x2c0] sm:$0xff]  ;;  %v174_v52 = vld [vmem:[#allocation3 + $0x488] sm:$0xff] }
  0x85   :  { %1307 = vmatprep.subr.mxu0 %v1829_v0  ;;  %805 = vmatprep.mubr.f32.mxu1 %v306_v53  ;;  %v365_v53 = vld [vmem:[#allocation3 + $0xa80] sm:$0xff] }
  0x86   :  { %1308 = vmatpush1.msra.mxu0 %v479_v54  ;;  %645 = vmatprep.mubr.f32.mxu0 %v114_v55  ;;  %v173_v54 = vld [vmem:[#allocation3 + $0x480] sm:$0xff]  ;;  %v468_v55 = vld [vmem:[%s2787_s1 + $0x1b8] sm:$0xff] }
  0x87   :  { %806 = vmatmul.mubr.f32.gmra.mxu1 %v305_v56  ;;  %924 = vmatprep.subr.mxu1 %v1829_v0  ;;  %v372_v56 = vld [vmem:[#allocation3 + $0xab8] sm:$0xff] }
  0x88   :  { %646 = vmatmul.mubr.f32.gmra.mxu0 %v113_v57  ;;  %925 = vmatpush1.msra.mxu1 %v446_v58  ;;  %v500_v57 = vld [vmem:[%s2787_s1 + $0x2b8] sm:$0xff] }
  0x89   :  { %1309 = vmatprep.subr.mxu0 %v1829_v0  ;;  %810 = vmatprep.mubr.f32.mxu1 %v312_v59  ;;  %v180_v58 = vld [vmem:[#allocation3 + $0x4b8] sm:$0xff]  ;;  %v371_v59 = vld [vmem:[#allocation3 + $0xab0] sm:$0xff] }
  0x8a   :  { %1310 = vmatpush1.msra.mxu0 %v478_v60  ;;  %650 = vmatprep.mubr.f32.mxu0 %v120_v61  ;;  %v179_v60 = vld [vmem:[#allocation3 + $0x4b0] sm:$0xff] }
  0x8b   :  { %811 = vmatmul.mubr.f32.gmra.mxu1 %v311_v62  ;;  %926 = vmatprep.subr.mxu1 %v1829_v0  ;;  %v467_v61 = vld [vmem:[%s2787_s1 + $0x1b0] sm:$0xff]  ;;  %v378_v62 = vld [vmem:[#allocation3 + $0xae8] sm:$0xff] }
  0x8c   :  { %651 = vmatmul.mubr.f32.gmra.mxu0 %v119_v63  ;;  %927 = vmatpush1.msra.mxu1 %v445_v1  ;;  %v499_v63 = vld [vmem:[%s2787_s1 + $0x2b0] sm:$0xff]  ;;  %v186_v1 = vld [vmem:[#allocation3 + $0x4e8] sm:$0xff] }
  0x8d   :  { %1311 = vmatprep.subr.mxu0 %v1829_v0  ;;  %815 = vmatprep.mubr.f32.mxu1 %v318_v2  ;;  %v377_v2 = vld [vmem:[#allocation3 + $0xae0] sm:$0xff] }
  0x8e   :  { %1312 = vmatpush1.msra.mxu0 %v477_v3  ;;  %655 = vmatprep.mubr.f32.mxu0 %v126_v4  ;;  %v185_v3 = vld [vmem:[#allocation3 + $0x4e0] sm:$0xff]  ;;  %v466_v4 = vld [vmem:[%s2787_s1 + $0x1a8] sm:$0xff] }
  0x8f   :  { %816 = vmatmul.mubr.f32.gmra.mxu1 %v317_v5  ;;  %928 = vmatprep.subr.mxu1 %v1829_v0  ;;  %v384_v5 = vld [vmem:[#allocation3 + $0xb18] sm:$0xff] }
  0x90   :  { %656 = vmatmul.mubr.f32.gmra.mxu0 %v125_v6  ;;  %929 = vmatpush2.msra.mxu1 %v476_v7  ;;  %v498_v6 = vld [vmem:[%s2787_s1 + $0x2a8] sm:$0xff]  ;;  %v192_v7 = vld [vmem:[#allocation3 + $0x518] sm:$0xff] }
  0x91   :  { %1313 = vmatprep.subr.mxu0 %v1829_v0  ;;  %820 = vmatprep.mubr.f32.mxu1 %v324_v8  ;;  %v383_v8 = vld [vmem:[#allocation3 + $0xb10] sm:$0xff] }
  0x92   :  { %1314 = vmatpush2.msra.mxu0 %v508_v9  ;;  %660 = vmatprep.mubr.f32.mxu0 %v132_v10  ;;  %v191_v9 = vld [vmem:[#allocation3 + $0x510] sm:$0xff]  ;;  %v465_v10 = vld [vmem:[%s2787_s1 + $0x1a0] sm:$0xff] }
  0x93   :  { %821 = vmatmul.mubr.f32.gmra.mxu1 %v323_v11  ;;  %930 = vmatprep.subr.mxu1 %v1829_v0  ;;  %v390_v11 = vld [vmem:[#allocation3 + $0xb48] sm:$0xff] }
  0x94   :  { %661 = vmatmul.mubr.f32.gmra.mxu0 %v131_v12  ;;  %931 = vmatpush2.msra.mxu1 %v475_v13  ;;  %v497_v12 = vld [vmem:[%s2787_s1 + $0x2a0] sm:$0xff]  ;;  %v198_v13 = vld [vmem:[#allocation3 + $0x548] sm:$0xff] }
  0x95   :  { %1315 = vmatprep.subr.mxu0 %v1829_v0  ;;  %825 = vmatprep.mubr.f32.mxu1 %v330_v14  ;;  %v389_v14 = vld [vmem:[#allocation3 + $0xb40] sm:$0xff] }
  0x96   :  { %1316 = vmatpush2.msra.mxu0 %v507_v15  ;;  %665 = vmatprep.mubr.f32.mxu0 %v138_v16  ;;  %v197_v15 = vld [vmem:[#allocation3 + $0x540] sm:$0xff]  ;;  %v464_v16 = vld [vmem:[%s2787_s1 + $0x198] sm:$0xff] }
  0x97   :  { %826 = vmatmul.mubr.f32.gmra.mxu1 %v329_v17  ;;  %932 = vmatprep.subr.mxu1 %v1829_v0  ;;  %v396_v17 = vld [vmem:[#allocation3 + $0xb78] sm:$0xff] }
  0x98   :  { %666 = vmatmul.mubr.f32.gmra.mxu0 %v137_v18  ;;  %933 = vmatpush2.msra.mxu1 %v474_v19  ;;  %v496_v18 = vld [vmem:[%s2787_s1 + $0x298] sm:$0xff] }
  0x99   :  { %1317 = vmatprep.subr.mxu0 %v1829_v0  ;;  %830 = vmatprep.mubr.f32.mxu1 %v336_v20  ;;  %v204_v19 = vld [vmem:[#allocation3 + $0x578] sm:$0xff]  ;;  %v395_v20 = vld [vmem:[#allocation3 + $0xb70] sm:$0xff] }
  0x9a   :  { %1318 = vmatpush2.msra.mxu0 %v506_v21  ;;  %670 = vmatprep.mubr.f32.mxu0 %v144_v22  ;;  %v203_v21 = vld [vmem:[#allocation3 + $0x570] sm:$0xff] }
  0x9b   :  { %831 = vmatmul.mubr.f32.gmra.mxu1 %v335_v23  ;;  %934 = vmatprep.subr.mxu1 %v1829_v0  ;;  %v463_v22 = vld [vmem:[%s2787_s1 + $0x190] sm:$0xff]  ;;  %v402_v23 = vld [vmem:[#allocation3 + $0xba8] sm:$0xff] }
  0x9c   :  { %671 = vmatmul.mubr.f32.gmra.mxu0 %v143_v24  ;;  %935 = vmatpush2.msra.mxu1 %v473_v25  ;;  %v495_v24 = vld [vmem:[%s2787_s1 + $0x290] sm:$0xff]  ;;  %v210_v25 = vld [vmem:[#allocation3 + $0x5a8] sm:$0xff] }
  0x9d   :  { %1319 = vmatprep.subr.mxu0 %v1829_v0  ;;  %835 = vmatprep.mubr.f32.mxu1 %v342_v26  ;;  %v401_v26 = vld [vmem:[#allocation3 + $0xba0] sm:$0xff] }
  0x9e   :  { %1320 = vmatpush2.msra.mxu0 %v505_v27  ;;  %675 = vmatprep.mubr.f32.mxu0 %v150_v28  ;;  %v209_v27 = vld [vmem:[#allocation3 + $0x5a0] sm:$0xff]  ;;  %v462_v28 = vld [vmem:[%s2787_s1 + $0x188] sm:$0xff] }
  0x9f   :  { %836 = vmatmul.mubr.f32.gmra.mxu1 %v341_v29  ;;  %936 = vmatprep.subr.mxu1 %v1829_v0  ;;  %v408_v29 = vld [vmem:[#allocation3 + $0xbd8] sm:$0xff] }
  0xa0   :  { %676 = vmatmul.mubr.f32.gmra.mxu0 %v149_v30  ;;  %937 = vmatpush2.msra.mxu1 %v472_v31  ;;  %v494_v30 = vld [vmem:[%s2787_s1 + $0x288] sm:$0xff]  ;;  %v216_v31 = vld [vmem:[#allocation3 + $0x5d8] sm:$0xff] }
  0xa1   :  { %1321 = vmatprep.subr.mxu0 %v1829_v0  ;;  %840 = vmatprep.mubr.f32.mxu1 %v348_v32  ;;  %v407_v32 = vld [vmem:[#allocation3 + $0xbd0] sm:$0xff] }
  0xa2   :  { %1322 = vmatpush2.msra.mxu0 %v504_v33  ;;  %680 = vmatprep.mubr.f32.mxu0 %v156_v34  ;;  %v215_v33 = vld [vmem:[#allocation3 + $0x5d0] sm:$0xff]  ;;  %v461_v34 = vld [vmem:[%s2787_s1 + $0x180] sm:$0xff] }
  0xa3   :  { %841 = vmatmul.mubr.f32.gmra.mxu1 %v347_v35  ;;  %938 = vmatprep.subr.mxu1 %v1829_v0  ;;  %v32_v35 = vld [vmem:[#allocation3 + $0x18] sm:$0xff] }
  0xa4   :  { %681 = vmatmul.mubr.f32.gmra.mxu0 %v155_v36  ;;  %939 = vmatpush2.msra.mxu1 %v471_v37  ;;  %v493_v36 = vld [vmem:[%s2787_s1 + $0x280] sm:$0xff]  ;;  %v34_v37 = vld [vmem:[#allocation3 + $0x28] sm:$0xff] }
  0xa5   :  { %1323 = vmatprep.subr.mxu0 %v1829_v0  ;;  %845 = vmatprep.mubr.f32.mxu1 %v354_v38  ;;  %v31_v38 = vld [vmem:[#allocation3 + $0x10] sm:$0xff] }
  0xa6   :  { %1324 = vmatpush2.msra.mxu0 %v503_v39  ;;  %685 = vmatprep.mubr.f32.mxu0 %v162_v40  ;;  %v33_v39 = vld [vmem:[#allocation3 + $0x20] sm:$0xff]  ;;  %v38_v40 = vld [vmem:[#allocation3 + $0x48] sm:$0xff] }
  0xa7   :  { %846 = vmatmul.mubr.f32.gmra.mxu1 %v353_v41  ;;  %940 = vmatprep.subr.mxu1 %v1829_v0  ;;  %v40_v41 = vld [vmem:[#allocation3 + $0x58] sm:$0xff] }
  0xa8   :  { %686 = vmatmul.mubr.f32.gmra.mxu0 %v161_v42  ;;  %941 = vmatpush2.msra.mxu1 %v470_v43  ;;  %v37_v42 = vld [vmem:[#allocation3 + $0x40] sm:$0xff]  ;;  %v39_v43 = vld [vmem:[#allocation3 + $0x50] sm:$0xff] }
  0xa9   :  { %1325 = vmatprep.subr.mxu0 %v1829_v0  ;;  %850 = vmatprep.mubr.f32.mxu1 %v360_v44  ;;  %v44_v44 = vld [vmem:[#allocation3 + $0x78] sm:$0xff] }
  0xaa   :  { %1326 = vmatpush2.msra.mxu0 %v502_v45  ;;  %690 = vmatprep.mubr.f32.mxu0 %v168_v46  ;;  %v46_v45 = vld [vmem:[#allocation3 + $0x88] sm:$0xff]  ;;  %v43_v46 = vld [vmem:[#allocation3 + $0x70] sm:$0xff] }
  0xab   :  { %851 = vmatmul.mubr.f32.gmra.mxu1 %v359_v47  ;;  %942 = vmatprep.subr.mxu1 %v1829_v0  ;;  %v50_v47 = vld [vmem:[#allocation3 + $0xa8] sm:$0xff] }
  0xac   :  { %691 = vmatmul.mubr.f32.gmra.mxu0 %v167_v48  ;;  %943 = vmatpush2.msra.mxu1 %v469_v49  ;;  %v52_v48 = vld [vmem:[#allocation3 + $0xb8] sm:$0xff]  ;;  %v49_v49 = vld [vmem:[#allocation3 + $0xa0] sm:$0xff] }
  0xad   :  { %1327 = vmatprep.subr.mxu0 %v1829_v0  ;;  %855 = vmatprep.mubr.f32.mxu1 %v366_v50  ;;  %v51_v50 = vld [vmem:[#allocation3 + $0xb0] sm:$0xff] }
  0xae   :  { %1328 = vmatpush2.msra.mxu0 %v501_v51  ;;  %695 = vmatprep.mubr.f32.mxu0 %v174_v52  ;;  %v56_v51 = vld [vmem:[#allocation3 + $0xd8] sm:$0xff]  ;;  %v58_v52 = vld [vmem:[#allocation3 + $0xe8] sm:$0xff] }
  0xaf   :  { %856 = vmatmul.mubr.f32.gmra.mxu1 %v365_v53  ;;  %944 = vmatprep.subr.mxu1 %v1829_v0  ;;  %v55_v53 = vld [vmem:[#allocation3 + $0xd0] sm:$0xff] }
  0xb0   :  { %696 = vmatmul.mubr.f32.gmra.mxu0 %v173_v54  ;;  %945 = vmatpush2.msra.mxu1 %v468_v55  ;;  %v57_v54 = vld [vmem:[#allocation3 + $0xe0] sm:$0xff]  ;;  %v62_v55 = vld [vmem:[#allocation3 + $0x108] sm:$0xff] }
  0xb1   :  { %1329 = vmatprep.subr.mxu0 %v1829_v0  ;;  %860 = vmatprep.mubr.f32.mxu1 %v372_v56  ;;  %v64_v56 = vld [vmem:[#allocation3 + $0x118] sm:$0xff] }
  0xb2   :  { %1330 = vmatpush2.msra.mxu0 %v500_v57  ;;  %700 = vmatprep.mubr.f32.mxu0 %v180_v58  ;;  %v61_v57 = vld [vmem:[#allocation3 + $0x100] sm:$0xff]  ;;  %v63_v58 = vld [vmem:[#allocation3 + $0x110] sm:$0xff] }
  0xb3   :  { %861 = vmatmul.mubr.f32.gmra.mxu1 %v371_v59  ;;  %946 = vmatprep.subr.mxu1 %v1829_v0  ;;  %v68_v59 = vld [vmem:[#allocation3 + $0x138] sm:$0xff] }
  0xb4   :  { %701 = vmatmul.mubr.f32.gmra.mxu0 %v179_v60  ;;  %947 = vmatpush2.msra.mxu1 %v467_v61  ;;  %v70_v60 = vld [vmem:[#allocation3 + $0x148] sm:$0xff]  ;;  %v67_v61 = vld [vmem:[#allocation3 + $0x130] sm:$0xff] }
  0xb5   :  { %1331 = vmatprep.subr.mxu0 %v1829_v0  ;;  %865 = vmatprep.mubr.f32.mxu1 %v378_v62  ;;  %v69_v62 = vld [vmem:[#allocation3 + $0x140] sm:$0xff] }
  0xb6   :  { %1332 = vmatpush2.msra.mxu0 %v499_v63  ;;  %705 = vmatprep.mubr.f32.mxu0 %v186_v1  ;;  %v74_v63 = vld [vmem:[#allocation3 + $0x168] sm:$0xff]  ;;  %v76_v1 = vld [vmem:[#allocation3 + $0x178] sm:$0xff] }
  0xb7   :  { %866 = vmatmul.mubr.f32.gmra.mxu1 %v377_v2  ;;  %948 = vmatprep.subr.mxu1 %v1829_v0  ;;  %v73_v2 = vld [vmem:[#allocation3 + $0x160] sm:$0xff] }
  0xb8   :  { %706 = vmatmul.mubr.f32.gmra.mxu0 %v185_v3  ;;  %949 = vmatpush2.msra.mxu1 %v466_v4  ;;  %v75_v3 = vld [vmem:[#allocation3 + $0x170] sm:$0xff]  ;;  %v80_v4 = vld [vmem:[#allocation3 + $0x198] sm:$0xff] }
  0xb9   :  { %1333 = vmatprep.subr.mxu0 %v1829_v0  ;;  %870 = vmatprep.mubr.f32.mxu1 %v384_v5  ;;  %v82_v5 = vld [vmem:[#allocation3 + $0x1a8] sm:$0xff] }
  0xba   :  { %1334 = vmatpush2.msra.mxu0 %v498_v6  ;;  %710 = vmatprep.mubr.f32.mxu0 %v192_v7  ;;  %v79_v6 = vld [vmem:[#allocation3 + $0x190] sm:$0xff]  ;;  %v81_v7 = vld [vmem:[#allocation3 + $0x1a0] sm:$0xff] }
  0xbb   :  { %871 = vmatmul.mubr.f32.gmra.mxu1 %v383_v8  ;;  %950 = vmatprep.subr.mxu1 %v1829_v0  ;;  %v86_v8 = vld [vmem:[#allocation3 + $0x1c8] sm:$0xff] }
  0xbc   :  { %711 = vmatmul.mubr.f32.gmra.mxu0 %v191_v9  ;;  %951 = vmatpush2.msra.mxu1 %v465_v10  ;;  %v88_v9 = vld [vmem:[#allocation3 + $0x1d8] sm:$0xff]  ;;  %v85_v10 = vld [vmem:[#allocation3 + $0x1c0] sm:$0xff] }
  0xbd   :  { %1335 = vmatprep.subr.mxu0 %v1829_v0  ;;  %875 = vmatprep.mubr.f32.mxu1 %v390_v11  ;;  %v87_v11 = vld [vmem:[#allocation3 + $0x1d0] sm:$0xff] }
  0xbe   :  { %1336 = vmatpush2.msra.mxu0 %v497_v12  ;;  %715 = vmatprep.mubr.f32.mxu0 %v198_v13  ;;  %v92_v12 = vld [vmem:[#allocation3 + $0x1f8] sm:$0xff]  ;;  %v94_v13 = vld [vmem:[#allocation3 + $0x208] sm:$0xff] }
  0xbf   :  { %876 = vmatmul.mubr.f32.gmra.mxu1 %v389_v14  ;;  %952 = vmatprep.subr.mxu1 %v1829_v0  ;;  %v91_v14 = vld [vmem:[#allocation3 + $0x1f0] sm:$0xff] }
  0xc0   :  { %716 = vmatmul.mubr.f32.gmra.mxu0 %v197_v15  ;;  %953 = vmatpush2.msra.mxu1 %v464_v16  ;;  %v93_v15 = vld [vmem:[#allocation3 + $0x200] sm:$0xff]  ;;  %v98_v16 = vld [vmem:[#allocation3 + $0x228] sm:$0xff] }
  0xc1   :  { %1337 = vmatprep.subr.mxu0 %v1829_v0  ;;  %880 = vmatprep.mubr.f32.mxu1 %v396_v17  ;;  %v100_v17 = vld [vmem:[#allocation3 + $0x238] sm:$0xff] }
  0xc2   :  { %1338 = vmatpush2.msra.mxu0 %v496_v18  ;;  %720 = vmatprep.mubr.f32.mxu0 %v204_v19  ;;  %v97_v18 = vld [vmem:[#allocation3 + $0x220] sm:$0xff]  ;;  %v99_v19 = vld [vmem:[#allocation3 + $0x230] sm:$0xff] }
  0xc3   :  { %881 = vmatmul.mubr.f32.gmra.mxu1 %v395_v20  ;;  %954 = vmatprep.subr.mxu1 %v1829_v0  ;;  %v104_v20 = vld [vmem:[#allocation3 + $0x258] sm:$0xff] }
  0xc4   :  { %721 = vmatmul.mubr.f32.gmra.mxu0 %v203_v21  ;;  %955 = vmatpush2.msra.mxu1 %v463_v22  ;;  %v106_v21 = vld [vmem:[#allocation3 + $0x268] sm:$0xff]  ;;  %v103_v22 = vld [vmem:[#allocation3 + $0x250] sm:$0xff] }
  0xc5   :  { %1339 = vmatprep.subr.mxu0 %v1829_v0  ;;  %885 = vmatprep.mubr.f32.mxu1 %v402_v23  ;;  %v105_v23 = vld [vmem:[#allocation3 + $0x260] sm:$0xff] }
  0xc6   :  { %1340 = vmatpush2.msra.mxu0 %v495_v24  ;;  %725 = vmatprep.mubr.f32.mxu0 %v210_v25  ;;  %v110_v24 = vld [vmem:[#allocation3 + $0x288] sm:$0xff]  ;;  %v112_v25 = vld [vmem:[#allocation3 + $0x298] sm:$0xff] }
  0xc7   :  { %886 = vmatmul.mubr.f32.gmra.mxu1 %v401_v26  ;;  %956 = vmatprep.subr.mxu1 %v1829_v0  ;;  %v109_v26 = vld [vmem:[#allocation3 + $0x280] sm:$0xff] }
  0xc8   :  { %726 = vmatmul.mubr.f32.gmra.mxu0 %v209_v27  ;;  %957 = vmatpush2.msra.mxu1 %v462_v28  ;;  %v111_v27 = vld [vmem:[#allocation3 + $0x290] sm:$0xff]  ;;  %v116_v28 = vld [vmem:[#allocation3 + $0x2b8] sm:$0xff] }
  0xc9   :  { %1341 = vmatprep.subr.mxu0 %v1829_v0  ;;  %890 = vmatprep.mubr.f32.mxu1 %v408_v29  ;;  %v118_v29 = vld [vmem:[#allocation3 + $0x2c8] sm:$0xff] }
  0xca   :  { %1342 = vmatpush2.msra.mxu0 %v494_v30  ;;  %730 = vmatprep.mubr.f32.mxu0 %v216_v31  ;;  %v115_v30 = vld [vmem:[#allocation3 + $0x2b0] sm:$0xff]  ;;  %v117_v31 = vld [vmem:[#allocation3 + $0x2c0] sm:$0xff] }
  0xcb   :  { %891 = vmatmul.mubr.f32.gmra.mxu1 %v407_v32  ;;  %958 = vmatprep.subr.mxu1 %v1829_v0  ;;  %v122_v32 = vld [vmem:[#allocation3 + $0x2e8] sm:$0xff] }
  0xcc   :  { %731 = vmatmul.mubr.f32.gmra.mxu0 %v215_v33  ;;  %959 = vmatpush2.msra.mxu1 %v461_v34  ;;  %v124_v33 = vld [vmem:[#allocation3 + $0x2f8] sm:$0xff]  ;;  %v121_v34 = vld [vmem:[#allocation3 + $0x2e0] sm:$0xff] }
  0xcd   :  { %1343 = vmatprep.subr.mxu0 %v1829_v0  ;;  %960 = vmatprep.mubr.f32.mxu1 %v32_v35  ;;  %v45_v0 = vld [vmem:[#allocation3 + $0x80] sm:$0xff]  ;;  %v123_v35 = vld [vmem:[#allocation3 + $0x2f0] sm:$0xff] }
  0xce   :  { %1344 = vmatpush2.msra.mxu0 %v493_v36  ;;  %1345 = vmatprep.mubr.f32.mxu0 %v34_v37  ;;  %v128_v36 = vld [vmem:[#allocation3 + $0x318] sm:$0xff]  ;;  %v130_v37 = vld [vmem:[#allocation3 + $0x328] sm:$0xff] }
  0xcf   :  { %961 = vmatmul.mubr.f32.vlgmr.msra.gmra.mxu1 %v31_v38  ;;  %v127_v38 = vld [vmem:[#allocation3 + $0x310] sm:$0xff] }
  0xd0   :  { %1346 = vmatmul.mubr.f32.vlgmr.msra.gmra.mxu0 %v33_v39  ;;  %965 = vmatprep.mubr.f32.mxu1 %v38_v40  ;;  %v129_v39 = vld [vmem:[#allocation3 + $0x320] sm:$0xff]  ;;  %v134_v40 = vld [vmem:[#allocation3 + $0x348] sm:$0xff] }
  0xd1   :  { %1350 = vmatprep.mubr.f32.mxu0 %v40_v41  ;;  %v136_v41 = vld [vmem:[#allocation3 + $0x358] sm:$0xff] }
  0xd3   :  { %966 = vmatmul.mubr.f32.gmra.mxu1 %v37_v42 }
  0xd4   :  { %1351 = vmatmul.mubr.f32.gmra.mxu0 %v39_v43  ;;  %970 = vmatprep.mubr.f32.mxu1 %v44_v44  ;;  %v133_v44 = vld [vmem:[#allocation3 + $0x340] sm:$0xff] }
  0xd5   :  { %1355 = vmatprep.mubr.f32.mxu0 %v46_v45 }
  0xd7   :  { %971 = vmatmul.mubr.f32.gmra.mxu1 %v43_v46  ;;  %v135_v46 = vld [vmem:[#allocation3 + $0x350] sm:$0xff] }
  0xd8   :  { %1356 = vmatmul.mubr.f32.gmra.mxu0 %v45_v0  ;;  %975 = vmatprep.mubr.f32.mxu1 %v50_v47  ;;  %v140_v0 = vld [vmem:[#allocation3 + $0x378] sm:$0xff] }
  0xd9   :  { %1360 = vmatprep.mubr.f32.mxu0 %v52_v48  ;;  %v142_v48 = vld [vmem:[#allocation3 + $0x388] sm:$0xff] }
  0xdb   :  { %976 = vmatmul.mubr.f32.gmra.mxu1 %v49_v49 }
  0xdc   :  { %1361 = vmatmul.mubr.f32.gmra.mxu0 %v51_v50  ;;  %980 = vmatprep.mubr.f32.mxu1 %v56_v51  ;;  %v139_v51 = vld [vmem:[#allocation3 + $0x370] sm:$0xff] }
  0xdd   :  { %1365 = vmatprep.mubr.f32.mxu0 %v58_v52 }
  0xdf   :  { %981 = vmatmul.mubr.f32.gmra.mxu1 %v55_v53  ;;  %v141_v53 = vld [vmem:[#allocation3 + $0x380] sm:$0xff] }
  0xe0   :  { %1366 = vmatmul.mubr.f32.gmra.mxu0 %v57_v54  ;;  %985 = vmatprep.mubr.f32.mxu1 %v62_v55  ;;  %v146_v54 = vld [vmem:[#allocation3 + $0x3a8] sm:$0xff] }
  0xe1   :  { %1370 = vmatprep.mubr.f32.mxu0 %v64_v56  ;;  %v148_v56 = vld [vmem:[#allocation3 + $0x3b8] sm:$0xff] }
  0xe3   :  { %986 = vmatmul.mubr.f32.gmra.mxu1 %v61_v57 }
  0xe4   :  { %1371 = vmatmul.mubr.f32.gmra.mxu0 %v63_v58  ;;  %990 = vmatprep.mubr.f32.mxu1 %v68_v59  ;;  %v145_v59 = vld [vmem:[#allocation3 + $0x3a0] sm:$0xff] }
  0xe5   :  { %1375 = vmatprep.mubr.f32.mxu0 %v70_v60 }
  0xe7   :  { %991 = vmatmul.mubr.f32.gmra.mxu1 %v67_v61  ;;  %v147_v61 = vld [vmem:[#allocation3 + $0x3b0] sm:$0xff] }
  0xe8   :  { %1376 = vmatmul.mubr.f32.gmra.mxu0 %v69_v62  ;;  %995 = vmatprep.mubr.f32.mxu1 %v74_v63  ;;  %v152_v62 = vld [vmem:[#allocation3 + $0x3d8] sm:$0xff] }
  0xe9   :  { %1380 = vmatprep.mubr.f32.mxu0 %v76_v1  ;;  %v154_v1 = vld [vmem:[#allocation3 + $0x3e8] sm:$0xff] }
  0xeb   :  { %996 = vmatmul.mubr.f32.gmra.mxu1 %v73_v2 }
  0xec   :  { %1381 = vmatmul.mubr.f32.gmra.mxu0 %v75_v3  ;;  %1000 = vmatprep.mubr.f32.mxu1 %v80_v4  ;;  %v151_v4 = vld [vmem:[#allocation3 + $0x3d0] sm:$0xff] }
  0xed   :  { %1385 = vmatprep.mubr.f32.mxu0 %v82_v5 }
  0xef   :  { %1001 = vmatmul.mubr.f32.gmra.mxu1 %v79_v6  ;;  %v153_v6 = vld [vmem:[#allocation3 + $0x3e0] sm:$0xff] }
  0xf0   :  { %1386 = vmatmul.mubr.f32.gmra.mxu0 %v81_v7  ;;  %1005 = vmatprep.mubr.f32.mxu1 %v86_v8  ;;  %v158_v7 = vld [vmem:[#allocation3 + $0x408] sm:$0xff] }
  0xf1   :  { %1390 = vmatprep.mubr.f32.mxu0 %v88_v9  ;;  %v160_v9 = vld [vmem:[#allocation3 + $0x418] sm:$0xff] }
  0xf3   :  { %1006 = vmatmul.mubr.f32.gmra.mxu1 %v85_v10 }
  0xf4   :  { %1391 = vmatmul.mubr.f32.gmra.mxu0 %v87_v11  ;;  %1010 = vmatprep.mubr.f32.mxu1 %v92_v12  ;;  %v157_v12 = vld [vmem:[#allocation3 + $0x400] sm:$0xff] }
  0xf5   :  { %1395 = vmatprep.mubr.f32.mxu0 %v94_v13 }
  0xf7   :  { %1011 = vmatmul.mubr.f32.gmra.mxu1 %v91_v14  ;;  %v159_v14 = vld [vmem:[#allocation3 + $0x410] sm:$0xff] }
  0xf8   :  { %1396 = vmatmul.mubr.f32.gmra.mxu0 %v93_v15  ;;  %1015 = vmatprep.mubr.f32.mxu1 %v98_v16  ;;  %v164_v15 = vld [vmem:[#allocation3 + $0x438] sm:$0xff] }
  0xf9   :  { %1400 = vmatprep.mubr.f32.mxu0 %v100_v17  ;;  %v166_v17 = vld [vmem:[#allocation3 + $0x448] sm:$0xff] }
  0xfb   :  { %1016 = vmatmul.mubr.f32.gmra.mxu1 %v97_v18 }
  0xfc   :  { %1401 = vmatmul.mubr.f32.gmra.mxu0 %v99_v19  ;;  %1020 = vmatprep.mubr.f32.mxu1 %v104_v20  ;;  %v163_v20 = vld [vmem:[#allocation3 + $0x430] sm:$0xff] }
  0xfd   :  { %1405 = vmatprep.mubr.f32.mxu0 %v106_v21 }
  0xff   :  { %1021 = vmatmul.mubr.f32.gmra.mxu1 %v103_v22  ;;  %v165_v22 = vld [vmem:[#allocation3 + $0x440] sm:$0xff] }
 0x100   :  { %1406 = vmatmul.mubr.f32.gmra.mxu0 %v105_v23  ;;  %1025 = vmatprep.mubr.f32.mxu1 %v110_v24  ;;  %v170_v23 = vld [vmem:[#allocation3 + $0x468] sm:$0xff] }
 0x101   :  { %1410 = vmatprep.mubr.f32.mxu0 %v112_v25  ;;  %v172_v25 = vld [vmem:[#allocation3 + $0x478] sm:$0xff] }
 0x103   :  { %1026 = vmatmul.mubr.f32.gmra.mxu1 %v109_v26 }
 0x104   :  { %1411 = vmatmul.mubr.f32.gmra.mxu0 %v111_v27  ;;  %1030 = vmatprep.mubr.f32.mxu1 %v116_v28  ;;  %v169_v28 = vld [vmem:[#allocation3 + $0x460] sm:$0xff] }
 0x105   :  { %1415 = vmatprep.mubr.f32.mxu0 %v118_v29 }
 0x107   :  { %1031 = vmatmul.mubr.f32.gmra.mxu1 %v115_v30  ;;  %v171_v30 = vld [vmem:[#allocation3 + $0x470] sm:$0xff] }
 0x108   :  { %1416 = vmatmul.mubr.f32.gmra.mxu0 %v117_v31  ;;  %1035 = vmatprep.mubr.f32.mxu1 %v122_v32  ;;  %v176_v31 = vld [vmem:[#allocation3 + $0x498] sm:$0xff] }
 0x109   :  { %1420 = vmatprep.mubr.f32.mxu0 %v124_v33  ;;  %v178_v33 = vld [vmem:[#allocation3 + $0x4a8] sm:$0xff] }
 0x10b   :  { %1036 = vmatmul.mubr.f32.gmra.mxu1 %v121_v34 }
 0x10c   :  { %1421 = vmatmul.mubr.f32.gmra.mxu0 %v123_v35  ;;  %1040 = vmatprep.mubr.f32.mxu1 %v128_v36  ;;  %v175_v36 = vld [vmem:[#allocation3 + $0x490] sm:$0xff] }
 0x10d   :  { %1425 = vmatprep.mubr.f32.mxu0 %v130_v37 }
 0x10f   :  { %v2269_v42 = vpop.f32.mrf.mxu1  ;;  %1041 = vmatmul.mubr.f32.gmra.mxu1 %v127_v38  ;;  %v177_v38 = vld [vmem:[#allocation3 + $0x4a0] sm:$0xff] }
 0x110   :  { %v2271_v43 = vpop.f32.mrf.mxu0  ;;  %1426 = vmatmul.mubr.f32.gmra.mxu0 %v129_v39  ;;  %1045 = vmatprep.mubr.f32.mxu1 %v134_v40  ;;  %v182_v39 = vld [vmem:[#allocation3 + $0x4c8] sm:$0xff] }
 0x111   :  { %v739_v45 = vpop.f32.mrf.mxu1  ;;  %1430 = vmatprep.mubr.f32.mxu0 %v136_v41  ;;  %v184_v41 = vld [vmem:[#allocation3 + $0x4d8] sm:$0xff] }
 0x112   :  { %v579_v47 = vpop.f32.mrf.mxu0 }
 0x113   :  { %v2273_v49 = vpop.f32.mrf.mxu1  ;;  %1046 = vmatmul.mubr.f32.gmra.mxu1 %v133_v44  ;;  %v183_v47 = vld [vmem:[#allocation3 + $0x4d0] sm:$0xff] }
 0x114   :  { %v2275_v50 = vpop.f32.mrf.mxu0  ;;  %1431 = vmatmul.mubr.f32.gmra.mxu0 %v135_v46  ;;  %1050 = vmatprep.mubr.f32.mxu1 %v140_v0  ;;  %v181_v46 = vld [vmem:[#allocation3 + $0x4c0] sm:$0xff] }
 0x115   :  { %v744_v52 = vpop.f32.mrf.mxu1  ;;  %1435 = vmatprep.mubr.f32.mxu0 %v142_v48  ;;  %v188_v48 = vld [vmem:[#allocation3 + $0x4f8] sm:$0xff] }
 0x116   :  { %v584_v55 = vpop.f32.mrf.mxu0  ;;  %v190_v52 = vld [vmem:[#allocation3 + $0x508] sm:$0xff] }
 0x117   :  { %v2277_v57 = vpop.f32.mrf.mxu1  ;;  %1051 = vmatmul.mubr.f32.gmra.mxu1 %v139_v51  ;;  %v187_v55 = vld [vmem:[#allocation3 + $0x4f0] sm:$0xff] }
 0x118   :  { %v2279_v58 = vpop.f32.mrf.mxu0  ;;  %1436 = vmatmul.mubr.f32.gmra.mxu0 %v141_v53  ;;  %1055 = vmatprep.mubr.f32.mxu1 %v146_v54 }
 0x119   :  { %v749_v60 = vpop.f32.mrf.mxu1  ;;  %1440 = vmatprep.mubr.f32.mxu0 %v148_v56 }
 0x11a   :  { %v589_v63 = vpop.f32.mrf.mxu0  ;;  %v194_v60 = vld [vmem:[#allocation3 + $0x528] sm:$0xff] }
 0x11b   :  { %v2281_v2 = vpop.f32.mrf.mxu1  ;;  %1056 = vmatmul.mubr.f32.gmra.mxu1 %v145_v59  ;;  %v189_v59 = vld [vmem:[#allocation3 + $0x500] sm:$0xff] }
 0x11c   :  { %v2283_v3 = vpop.f32.mrf.mxu0  ;;  %1441 = vmatmul.mubr.f32.gmra.mxu0 %v147_v61  ;;  %1060 = vmatprep.mubr.f32.mxu1 %v152_v62  ;;  %v196_v62 = vld [vmem:[#allocation3 + $0x538] sm:$0xff] }
 0x11d   :  { %v754_v5 = vpop.f32.mrf.mxu1  ;;  %1445 = vmatprep.mubr.f32.mxu0 %v154_v1 }
 0x11e   :  { %v594_v8 = vpop.f32.mrf.mxu0 }
 0x11f   :  { %v2285_v10 = vpop.f32.mrf.mxu1  ;;  %1061 = vmatmul.mubr.f32.gmra.mxu1 %v151_v4  ;;  %v193_v4 = vld [vmem:[#allocation3 + $0x520] sm:$0xff] }
 0x120   :  { %v2287_v11 = vpop.f32.mrf.mxu0  ;;  %1446 = vmatmul.mubr.f32.gmra.mxu0 %v153_v6  ;;  %1065 = vmatprep.mubr.f32.mxu1 %v158_v7  ;;  %v195_v6 = vld [vmem:[#allocation3 + $0x530] sm:$0xff]  ;;  %v200_v7 = vld [vmem:[#allocation3 + $0x558] sm:$0xff] }
 0x121   :  { %v759_v13 = vpop.f32.mrf.mxu1  ;;  %1450 = vmatprep.mubr.f32.mxu0 %v160_v9  ;;  %v202_v9 = vld [vmem:[#allocation3 + $0x568] sm:$0xff] }
 0x122   :  { %v599_v16 = vpop.f32.mrf.mxu0 }
 0x123   :  { %v2289_v18 = vpop.f32.mrf.mxu1  ;;  %1066 = vmatmul.mubr.f32.gmra.mxu1 %v157_v12  ;;  %v201_v16 = vld [vmem:[#allocation3 + $0x560] sm:$0xff] }
 0x124   :  { %v2291_v19 = vpop.f32.mrf.mxu0  ;;  %1451 = vmatmul.mubr.f32.gmra.mxu0 %v159_v14  ;;  %1070 = vmatprep.mubr.f32.mxu1 %v164_v15  ;;  %v199_v14 = vld [vmem:[#allocation3 + $0x550] sm:$0xff] }
 0x125   :  { %v764_v21 = vpop.f32.mrf.mxu1  ;;  %1455 = vmatprep.mubr.f32.mxu0 %v166_v17  ;;  %v206_v17 = vld [vmem:[#allocation3 + $0x588] sm:$0xff] }
 0x126   :  { %v604_v24 = vpop.f32.mrf.mxu0  ;;  %v208_v21 = vld [vmem:[#allocation3 + $0x598] sm:$0xff] }
 0x127   :  { %v2293_v26 = vpop.f32.mrf.mxu1  ;;  %1071 = vmatmul.mubr.f32.gmra.mxu1 %v163_v20  ;;  %v205_v24 = vld [vmem:[#allocation3 + $0x580] sm:$0xff] }
 0x128   :  { %v2295_v27 = vpop.f32.mrf.mxu0  ;;  %1456 = vmatmul.mubr.f32.gmra.mxu0 %v165_v22  ;;  %1075 = vmatprep.mubr.f32.mxu1 %v170_v23 }
 0x129   :  { %v769_v29 = vpop.f32.mrf.mxu1  ;;  %1460 = vmatprep.mubr.f32.mxu0 %v172_v25 }
 0x12a   :  { %v609_v32 = vpop.f32.mrf.mxu0  ;;  %v212_v29 = vld [vmem:[#allocation3 + $0x5b8] sm:$0xff] }
 0x12b   :  { %v2297_v34 = vpop.f32.mrf.mxu1  ;;  %1076 = vmatmul.mubr.f32.gmra.mxu1 %v169_v28  ;;  %v207_v28 = vld [vmem:[#allocation3 + $0x590] sm:$0xff] }
 0x12c   :  { %v2299_v35 = vpop.f32.mrf.mxu0  ;;  %1461 = vmatmul.mubr.f32.gmra.mxu0 %v171_v30  ;;  %1080 = vmatprep.mubr.f32.mxu1 %v176_v31  ;;  %v214_v31 = vld [vmem:[#allocation3 + $0x5c8] sm:$0xff] }
 0x12d   :  { %v774_v37 = vpop.f32.mrf.mxu1  ;;  %1465 = vmatprep.mubr.f32.mxu0 %v178_v33 }
 0x12e   :  { %v614_v40 = vpop.f32.mrf.mxu0 }
 0x12f   :  { %v2301_v44 = vpop.f32.mrf.mxu1  ;;  %1081 = vmatmul.mubr.f32.gmra.mxu1 %v175_v36  ;;  %v211_v36 = vld [vmem:[#allocation3 + $0x5b0] sm:$0xff] }
 0x130   :  { %v2303_v45 = vpop.f32.mrf.mxu0  ;;  %1466 = vmatmul.mubr.f32.gmra.mxu0 %v177_v38  ;;  %1085 = vmatprep.mubr.f32.mxu1 %v182_v39  ;;  %v213_v38 = vld [vmem:[#allocation3 + $0x5c0] sm:$0xff]  ;;  %v218_v39 = vld [vmem:[#allocation3 + $0x5e8] sm:$0xff] }
 0x131   :  { %v779_v0 = vpop.f32.mrf.mxu1  ;;  %1470 = vmatprep.mubr.f32.mxu0 %v184_v41  ;;  %v220_v41 = vld [vmem:[#allocation3 + $0x5f8] sm:$0xff] }
 0x132   :  { %v619_v51 = vpop.f32.mrf.mxu0 }
 0x133   :  { %v2305_v53 = vpop.f32.mrf.mxu1  ;;  %1086 = vmatmul.mubr.f32.gmra.mxu1 %v181_v46  ;;  %v219_v51 = vld [vmem:[#allocation3 + $0x5f0] sm:$0xff] }
 0x134   :  { %v2307_v54 = vpop.f32.mrf.mxu0  ;;  %1471 = vmatmul.mubr.f32.gmra.mxu0 %v183_v47  ;;  %1090 = vmatprep.mubr.f32.mxu1 %v188_v48  ;;  %v217_v47 = vld [vmem:[#allocation3 + $0x5e0] sm:$0xff] }
 0x135   :  { %v784_v56 = vpop.f32.mrf.mxu1  ;;  %1475 = vmatprep.mubr.f32.mxu0 %v190_v52  ;;  %v224_v52 = vld [vmem:[#allocation3 + $0x618] sm:$0xff] }
 0x136   :  { %v624_v61 = vpop.f32.mrf.mxu0  ;;  %v226_v56 = vld [vmem:[#allocation3 + $0x628] sm:$0xff] }
 0x137   :  { %v2309_v63 = vpop.f32.mrf.mxu1  ;;  %1091 = vmatmul.mubr.f32.gmra.mxu1 %v187_v55  ;;  %v223_v61 = vld [vmem:[#allocation3 + $0x610] sm:$0xff] }
 0x138   :  { %v2311_v1 = vpop.f32.mrf.mxu0  ;;  %1476 = vmatmul.mubr.f32.gmra.mxu0 %v189_v59  ;;  %1095 = vmatprep.mubr.f32.mxu1 %v194_v60 }
 0x139   :  { %v789_v5 = vpop.f32.mrf.mxu1  ;;  %1480 = vmatprep.mubr.f32.mxu0 %v196_v62 }
 0x13a   :  { %v629_v8 = vpop.f32.mrf.mxu0  ;;  %v230_v5 = vld [vmem:[#allocation3 + $0x648] sm:$0xff] }
 0x13b   :  { %v2313_v12 = vpop.f32.mrf.mxu1  ;;  %1096 = vmatmul.mubr.f32.gmra.mxu1 %v193_v4  ;;  %v225_v4 = vld [vmem:[#allocation3 + $0x620] sm:$0xff] }
 0x13c   :  { %v2315_v13 = vpop.f32.mrf.mxu0  ;;  %1481 = vmatmul.mubr.f32.gmra.mxu0 %v195_v6  ;;  %1100 = vmatprep.mubr.f32.mxu1 %v200_v7  ;;  %v232_v7 = vld [vmem:[#allocation3 + $0x658] sm:$0xff] }
 0x13d   :  { %v794_v15 = vpop.f32.mrf.mxu1  ;;  %1485 = vmatprep.mubr.f32.mxu0 %v202_v9 }
 0x13e   :  { %v634_v20 = vpop.f32.mrf.mxu0 }
 0x13f   :  { %v2317_v22 = vpop.f32.mrf.mxu1  ;;  %1101 = vmatmul.mubr.f32.gmra.mxu1 %v199_v14  ;;  %v229_v14 = vld [vmem:[#allocation3 + $0x640] sm:$0xff] }
 0x140   :  { %v2319_v23 = vpop.f32.mrf.mxu0  ;;  %1486 = vmatmul.mubr.f32.gmra.mxu0 %v201_v16  ;;  %1105 = vmatprep.mubr.f32.mxu1 %v206_v17  ;;  %v231_v16 = vld [vmem:[#allocation3 + $0x650] sm:$0xff]  ;;  %v236_v17 = vld [vmem:[#allocation3 + $0x678] sm:$0xff] }
 0x141   :  { %v799_v25 = vpop.f32.mrf.mxu1  ;;  %1490 = vmatprep.mubr.f32.mxu0 %v208_v21  ;;  %v238_v21 = vld [vmem:[#allocation3 + $0x688] sm:$0xff] }
 0x142   :  { %v639_v30 = vpop.f32.mrf.mxu0 }
 0x143   :  { %v2321_v32 = vpop.f32.mrf.mxu1  ;;  %1106 = vmatmul.mubr.f32.gmra.mxu1 %v205_v24  ;;  %v237_v30 = vld [vmem:[#allocation3 + $0x680] sm:$0xff] }
 0x144   :  { %v2323_v33 = vpop.f32.mrf.mxu0  ;;  %1491 = vmatmul.mubr.f32.gmra.mxu0 %v207_v28  ;;  %1110 = vmatprep.mubr.f32.mxu1 %v212_v29  ;;  %v235_v28 = vld [vmem:[#allocation3 + $0x670] sm:$0xff] }
 0x145   :  { %v804_v37 = vpop.f32.mrf.mxu1  ;;  %1495 = vmatprep.mubr.f32.mxu0 %v214_v31  ;;  %v242_v31 = vld [vmem:[#allocation3 + $0x6a8] sm:$0xff] }
 0x146   :  { %v644_v40 = vpop.f32.mrf.mxu0  ;;  %v244_v37 = vld [vmem:[#allocation3 + $0x6b8] sm:$0xff] }
 0x147   :  { %v2325_v46 = vpop.f32.mrf.mxu1  ;;  %1111 = vmatmul.mubr.f32.gmra.mxu1 %v211_v36  ;;  %v241_v40 = vld [vmem:[#allocation3 + $0x6a0] sm:$0xff] }
 0x148   :  { %v2327_v0 = vpop.f32.mrf.mxu0  ;;  %1496 = vmatmul.mubr.f32.gmra.mxu0 %v213_v38  ;;  %1115 = vmatprep.mubr.f32.mxu1 %v218_v39 }
 0x149   :  { %v809_v48 = vpop.f32.mrf.mxu1  ;;  %1500 = vmatprep.mubr.f32.mxu0 %v220_v41 }
 0x14a   :  { %v649_v55 = vpop.f32.mrf.mxu0  ;;  %v248_v48 = vld [vmem:[#allocation3 + $0x6d8] sm:$0xff] }
 0x14b   :  { %v2329_v59 = vpop.f32.mrf.mxu1  ;;  %1116 = vmatmul.mubr.f32.gmra.mxu1 %v217_v47  ;;  %v243_v47 = vld [vmem:[#allocation3 + $0x6b0] sm:$0xff] }
 0x14c   :  { %2790 = vst [vmem:[#allocation6_spill] sm:$0xff] %v2329_v59  ;;  %v2331_v60 = vpop.f32.mrf.mxu0  ;;  %1501 = vmatmul.mubr.f32.gmra.mxu0 %v219_v51  ;;  %1120 = vmatprep.mubr.f32.mxu1 %v224_v52  ;;  %v250_v52 = vld [vmem:[#allocation3 + $0x6e8] sm:$0xff] }
 0x14d   :  { %v814_v62 = vpop.f32.mrf.mxu1  ;;  %1505 = vmatprep.mubr.f32.mxu0 %v226_v56 }
 0x14e   :  { %v654_v6 = vpop.f32.mrf.mxu0 }
 0x14f   :  { %v2333_v8 = vpop.f32.mrf.mxu1  ;;  %1121 = vmatmul.mubr.f32.gmra.mxu1 %v223_v61  ;;  %v247_v61 = vld [vmem:[#allocation3 + $0x6d0] sm:$0xff] }
 0x150   :  { %2791 = vst [vmem:[#allocation7_spill] sm:$0xff] %v2333_v8  ;;  %v2335_v9 = vpop.f32.mrf.mxu0  ;;  %1506 = vmatmul.mubr.f32.gmra.mxu0 %v225_v4  ;;  %1125 = vmatprep.mubr.f32.mxu1 %v230_v5  ;;  %v249_v4 = vld [vmem:[#allocation3 + $0x6e0] sm:$0xff]  ;;  %v254_v5 = vld [vmem:[#allocation3 + $0x708] sm:$0xff] }
 0x151   :  { %v819_v15 = vpop.f32.mrf.mxu1  ;;  %1510 = vmatprep.mubr.f32.mxu0 %v232_v7  ;;  %v256_v7 = vld [vmem:[#allocation3 + $0x718] sm:$0xff] }
 0x152   :  { %v659_v20 = vpop.f32.mrf.mxu0 }
 0x153   :  { %v2337_v24 = vpop.f32.mrf.mxu1  ;;  %1126 = vmatmul.mubr.f32.gmra.mxu1 %v229_v14  ;;  %v255_v20 = vld [vmem:[#allocation3 + $0x710] sm:$0xff] }
 0x154   :  { %2792 = vst [vmem:[#allocation8_spill] sm:$0xff] %v2337_v24  ;;  %v2339_v25 = vpop.f32.mrf.mxu0  ;;  %1511 = vmatmul.mubr.f32.gmra.mxu0 %v231_v16  ;;  %1130 = vmatprep.mubr.f32.mxu1 %v236_v17  ;;  %v253_v16 = vld [vmem:[#allocation3 + $0x700] sm:$0xff]  ;;  %v327_v24 = vld [vmem:[#allocation3 + $0x950] sm:$0xff] }
 0x155   :  { %v824_v29 = vpop.f32.mrf.mxu1  ;;  %1515 = vmatprep.mubr.f32.mxu0 %v238_v21  ;;  %v260_v21 = vld [vmem:[#allocation3 + $0x738] sm:$0xff] }
 0x156   :  { %v664_v36 = vpop.f32.mrf.mxu0  ;;  %v262_v29 = vld [vmem:[#allocation3 + $0x748] sm:$0xff] }
 0x157   :  { %v2341_v38 = vpop.f32.mrf.mxu1  ;;  %1131 = vmatmul.mubr.f32.gmra.mxu1 %v235_v28  ;;  %v259_v36 = vld [vmem:[#allocation3 + $0x730] sm:$0xff] }
 0x158   :  { %2793 = vst [vmem:[#allocation9_spill] sm:$0xff] %v2341_v38  ;;  %v2343_v39 = vpop.f32.mrf.mxu0  ;;  %1516 = vmatmul.mubr.f32.gmra.mxu0 %v237_v30  ;;  %1135 = vmatprep.mubr.f32.mxu1 %v242_v31 }
 0x159   :  { %v829_v41 = vpop.f32.mrf.mxu1  ;;  %1520 = vmatprep.mubr.f32.mxu0 %v244_v37 }
 0x15a   :  { %v669_v51 = vpop.f32.mrf.mxu0  ;;  %v266_v41 = vld [vmem:[#allocation3 + $0x768] sm:$0xff] }
 0x15b   :  { %v2345_v55 = vpop.f32.mrf.mxu1  ;;  %1136 = vmatmul.mubr.f32.gmra.mxu1 %v241_v40  ;;  %v261_v40 = vld [vmem:[#allocation3 + $0x740] sm:$0xff] }
 0x15c   :  { %2794 = vst [vmem:[#allocation10_spill] sm:$0xff] %v2345_v55  ;;  %v2347_v56 = vpop.f32.mrf.mxu0  ;;  %1521 = vmatmul.mubr.f32.gmra.mxu0 %v243_v47  ;;  %1140 = vmatprep.mubr.f32.mxu1 %v248_v48  ;;  %v268_v48 = vld [vmem:[#allocation3 + $0x778] sm:$0xff]  ;;  %v322_v55 = vld [vmem:[#allocation3 + $0x928] sm:$0xff] }
 0x15d   :  { %v834_v62 = vpop.f32.mrf.mxu1  ;;  %1525 = vmatprep.mubr.f32.mxu0 %v250_v52 }
 0x15e   :  { %v674_v6 = vpop.f32.mrf.mxu0 }
 0x15f   :  { %v2349_v14 = vpop.f32.mrf.mxu1  ;;  %1141 = vmatmul.mubr.f32.gmra.mxu1 %v247_v61  ;;  %v265_v61 = vld [vmem:[#allocation3 + $0x760] sm:$0xff] }
 0x160   :  { %2795 = vst [vmem:[#allocation11_spill] sm:$0xff] %v2349_v14  ;;  %v2351_v15 = vpop.f32.mrf.mxu0  ;;  %1526 = vmatmul.mubr.f32.gmra.mxu0 %v249_v4  ;;  %1145 = vmatprep.mubr.f32.mxu1 %v254_v5  ;;  %v267_v4 = vld [vmem:[#allocation3 + $0x770] sm:$0xff]  ;;  %v272_v5 = vld [vmem:[#allocation3 + $0x798] sm:$0xff] }
 0x161   :  { %v839_v17 = vpop.f32.mrf.mxu1  ;;  %1530 = vmatprep.mubr.f32.mxu0 %v256_v7  ;;  %v274_v7 = vld [vmem:[#allocation3 + $0x7a8] sm:$0xff]  ;;  %v316_v14 = vld [vmem:[#allocation3 + $0x8f8] sm:$0xff] }
 0x162   :  { %v679_v28 = vpop.f32.mrf.mxu0 }
 0x163   :  { %v2353_v30 = vpop.f32.mrf.mxu1  ;;  %1146 = vmatmul.mubr.f32.gmra.mxu1 %v253_v16  ;;  %v273_v28 = vld [vmem:[#allocation3 + $0x7a0] sm:$0xff] }
 0x164   :  { %2796 = vst [vmem:[#allocation12_spill] sm:$0xff] %v2353_v30  ;;  %v2355_v31 = vpop.f32.mrf.mxu0  ;;  %1531 = vmatmul.mubr.f32.gmra.mxu0 %v255_v20  ;;  %1150 = vmatprep.mubr.f32.mxu1 %v260_v21  ;;  %v271_v20 = vld [vmem:[#allocation3 + $0x790] sm:$0xff]  ;;  %v310_v30 = vld [vmem:[#allocation3 + $0x8c8] sm:$0xff] }
 0x165   :  { %v844_v37 = vpop.f32.mrf.mxu1  ;;  %1535 = vmatprep.mubr.f32.mxu0 %v262_v29  ;;  %v278_v29 = vld [vmem:[#allocation3 + $0x7c8] sm:$0xff] }
 0x166   :  { %v684_v47 = vpop.f32.mrf.mxu0  ;;  %v280_v37 = vld [vmem:[#allocation3 + $0x7d8] sm:$0xff] }
 0x167   :  { %v2357_v51 = vpop.f32.mrf.mxu1  ;;  %1151 = vmatmul.mubr.f32.gmra.mxu1 %v259_v36  ;;  %v277_v47 = vld [vmem:[#allocation3 + $0x7c0] sm:$0xff] }
 0x168   :  { %2797 = vst [vmem:[#allocation13_spill] sm:$0xff] %v2357_v51  ;;  %v2359_v52 = vpop.f32.mrf.mxu0  ;;  %1536 = vmatmul.mubr.f32.gmra.mxu0 %v261_v40  ;;  %1155 = vmatprep.mubr.f32.mxu1 %v266_v41  ;;  %v304_v51 = vld [vmem:[#allocation3 + $0x898] sm:$0xff] }
 0x169   :  { %v849_v62 = vpop.f32.mrf.mxu1  ;;  %1540 = vmatprep.mubr.f32.mxu0 %v268_v48 }
 0x16a   :  { %v689_v6 = vpop.f32.mrf.mxu0  ;;  %v284_v62 = vld [vmem:[#allocation3 + $0x7f8] sm:$0xff] }
 0x16b   :  { %v2361_v16 = vpop.f32.mrf.mxu1  ;;  %1156 = vmatmul.mubr.f32.gmra.mxu1 %v265_v61  ;;  %v279_v61 = vld [vmem:[#allocation3 + $0x7d0] sm:$0xff] }
 0x16c   :  { %2798 = vst [vmem:[#allocation14_spill] sm:$0xff] %v2361_v16  ;;  %v2363_v17 = vpop.f32.mrf.mxu0  ;;  %1541 = vmatmul.mubr.f32.gmra.mxu0 %v267_v4  ;;  %1160 = vmatprep.mubr.f32.mxu1 %v272_v5  ;;  %v286_v5 = vld [vmem:[#allocation3 + $0x808] sm:$0xff] }
 0x16d   :  { %v854_v21 = vpop.f32.mrf.mxu1  ;;  %1545 = vmatprep.mubr.f32.mxu0 %v274_v7  ;;  %v298_v16 = vld [vmem:[#allocation3 + $0x868] sm:$0xff] }
 0x16e   :  { %v694_v36 = vpop.f32.mrf.mxu0  ;;  %v283_v21 = vld [vmem:[#allocation3 + $0x7f0] sm:$0xff] }
 0x16f   :  { %v2365_v40 = vpop.f32.mrf.mxu1  ;;  %1161 = vmatmul.mubr.f32.gmra.mxu1 %v271_v20  ;;  %v285_v36 = vld [vmem:[#allocation3 + $0x800] sm:$0xff] }
 0x170   :  { %2799 = vst [vmem:[#allocation15_spill] sm:$0xff] %v2365_v40  ;;  %v2367_v41 = vpop.f32.mrf.mxu0  ;;  %1546 = vmatmul.mubr.f32.gmra.mxu0 %v273_v28  ;;  %1165 = vmatprep.mubr.f32.mxu1 %v278_v29  ;;  %v290_v28 = vld [vmem:[#allocation3 + $0x828] sm:$0xff]  ;;  %v292_v40 = vld [vmem:[#allocation3 + $0x838] sm:$0xff] }
 0x171   :  { %v859_v48 = vpop.f32.mrf.mxu1  ;;  %1550 = vmatprep.mubr.f32.mxu0 %v280_v37 }
 0x172   :  { %v699_v4 = vpop.f32.mrf.mxu0 }
 0x173   :  { %v2369_v6 = vpop.f32.mrf.mxu1  ;;  %1166 = vmatmul.mubr.f32.gmra.mxu1 %v277_v47  ;;  %v289_v4 = vld [vmem:[#allocation3 + $0x820] sm:$0xff] }
 0x174   :  { %2800 = vst [vmem:[#allocation16_spill] sm:$0xff] %v2369_v6  ;;  %v2371_v7 = vpop.f32.mrf.mxu0  ;;  %1551 = vmatmul.mubr.f32.gmra.mxu0 %v279_v61  ;;  %1170 = vmatprep.mubr.f32.mxu1 %v284_v62  ;;  %v291_v6 = vld [vmem:[#allocation3 + $0x830] sm:$0xff]  ;;  %v296_v61 = vld [vmem:[#allocation3 + $0x858] sm:$0xff] }
 0x175   :  { %v864_v20 = vpop.f32.mrf.mxu1  ;;  %1555 = vmatprep.mubr.f32.mxu0 %v286_v5 }
 0x176   :  { %v704_v29 = vpop.f32.mrf.mxu0 }
 0x177   :  { %v2373_v48 = vpop.f32.mrf.mxu1  ;;  %1171 = vmatmul.mubr.f32.gmra.mxu1 %v283_v21  ;;  %v295_v29 = vld [vmem:[#allocation3 + $0x850] sm:$0xff] }
 0x178   :  { %2801 = vst [vmem:[#allocation17_spill] sm:$0xff] %v2373_v48  ;;  %v2375_v37 = vpop.f32.mrf.mxu0  ;;  %1556 = vmatmul.mubr.f32.gmra.mxu0 %v285_v36  ;;  %1175 = vmatprep.mubr.f32.mxu1 %v290_v28  ;;  %v297_v48 = vld [vmem:[#allocation3 + $0x860] sm:$0xff]  ;;  %v302_v36 = vld [vmem:[#allocation3 + $0x888] sm:$0xff] }
 0x179   :  { %v869_v47 = vpop.f32.mrf.mxu1  ;;  %1560 = vmatprep.mubr.f32.mxu0 %v292_v40 }
 0x17a   :  { %v709_v62 = vpop.f32.mrf.mxu0 }
 0x17b   :  { %v2377_v20 = vpop.f32.mrf.mxu1  ;;  %1176 = vmatmul.mubr.f32.gmra.mxu1 %v289_v4  ;;  %v301_v62 = vld [vmem:[#allocation3 + $0x880] sm:$0xff] }
 0x17c   :  { %2802 = vst [vmem:[#allocation18_spill] sm:$0xff] %v2377_v20  ;;  %v2379_v5 = vpop.f32.mrf.mxu0  ;;  %1561 = vmatmul.mubr.f32.gmra.mxu0 %v291_v6  ;;  %1180 = vmatprep.mubr.f32.mxu1 %v296_v61  ;;  %v303_v20 = vld [vmem:[#allocation3 + $0x890] sm:$0xff]  ;;  %v308_v6 = vld [vmem:[#allocation3 + $0x8b8] sm:$0xff] }
 0x17d   :  { %v874_v21 = vpop.f32.mrf.mxu1  ;;  %1565 = vmatprep.mubr.f32.mxu0 %v298_v16 }
 0x17e   :  { %v714_v28 = vpop.f32.mrf.mxu0 }
 0x17f   :  { %v2381_v47 = vpop.f32.mrf.mxu1  ;;  %1181 = vmatmul.mubr.f32.gmra.mxu1 %v295_v29  ;;  %v307_v28 = vld [vmem:[#allocation3 + $0x8b0] sm:$0xff] }
 0x180   :  { %2803 = vst [vmem:[#allocation19_spill] sm:$0xff] %v2381_v47  ;;  %v2383_v40 = vpop.f32.mrf.mxu0  ;;  %1566 = vmatmul.mubr.f32.gmra.mxu0 %v297_v48  ;;  %1185 = vmatprep.mubr.f32.mxu1 %v302_v36  ;;  %v309_v47 = vld [vmem:[#allocation3 + $0x8c0] sm:$0xff]  ;;  %v314_v48 = vld [vmem:[#allocation3 + $0x8e8] sm:$0xff] }
 0x181   :  { %v879_v4 = vpop.f32.mrf.mxu1  ;;  %1570 = vmatprep.mubr.f32.mxu0 %v304_v51 }
 0x182   :  { %v719_v61 = vpop.f32.mrf.mxu0 }
 0x183   :  { %v2385_v21 = vpop.f32.mrf.mxu1  ;;  %1186 = vmatmul.mubr.f32.gmra.mxu1 %v301_v62  ;;  %v313_v61 = vld [vmem:[#allocation3 + $0x8e0] sm:$0xff] }
 0x184   :  { %2804 = vst [vmem:[#allocation20_spill] sm:$0xff] %v2385_v21  ;;  %v2387_v16 = vpop.f32.mrf.mxu0  ;;  %1571 = vmatmul.mubr.f32.gmra.mxu0 %v303_v20  ;;  %1190 = vmatprep.mubr.f32.mxu1 %v308_v6  ;;  %v315_v21 = vld [vmem:[#allocation3 + $0x8f0] sm:$0xff]  ;;  %v320_v20 = vld [vmem:[#allocation3 + $0x918] sm:$0xff] }
 0x185   :  { %v884_v29 = vpop.f32.mrf.mxu1  ;;  %1575 = vmatprep.mubr.f32.mxu0 %v310_v30 }
 0x186   :  { %v724_v36 = vpop.f32.mrf.mxu0 }
 0x187   :  { %v2389_v4 = vpop.f32.mrf.mxu1  ;;  %1191 = vmatmul.mubr.f32.gmra.mxu1 %v307_v28  ;;  %v319_v36 = vld [vmem:[#allocation3 + $0x910] sm:$0xff] }
 0x188   :  { %2805 = vst [vmem:[#allocation21_spill] sm:$0xff] %v2389_v4  ;;  %v2391_v51 = vpop.f32.mrf.mxu0  ;;  %1576 = vmatmul.mubr.f32.gmra.mxu0 %v309_v47  ;;  %1195 = vmatprep.mubr.f32.mxu1 %v314_v48  ;;  %v2400_v47 = vstv %s2788_s2  ;;  %v326_v48 = vld [vmem:[#allocation3 + $0x948] sm:$0xff] }
 0x189   :  { %v889_v62 = vpop.f32.mrf.mxu1  ;;  %1580 = vmatprep.mubr.f32.mxu0 %v316_v14  ;;  %v321_v14 = vld [vmem:[#allocation3 + $0x920] sm:$0xff] }
 0x18a   :  { %v729_v6 = vpop.f32.mrf.mxu0  ;;  %v578_v62 = vadd.f32 %v2271_v43, %v2400_v47  ;;  %v334_v43 = vld [vmem:[#allocation3 + $0x988] sm:$0xff] }
 0x18b   :  { %v2393_v29 = vpop.f32.mrf.mxu1  ;;  %1196 = vmatmul.mubr.f32.gmra.mxu1 %v313_v61 }
 0x18c   :  { %2806 = vst [vmem:[#allocation22_spill] sm:$0xff] %v2393_v29  ;;  %v2395_v30 = vpop.f32.mrf.mxu0  ;;  %1581 = vmatmul.mubr.f32.gmra.mxu0 %v315_v21  ;;  %1200 = vmatprep.mubr.f32.mxu1 %v320_v20  ;;  %v328_v29 = vld [vmem:[#allocation3 + $0x958] sm:$0xff]  ;;  %v325_v20 = vld [vmem:[#allocation3 + $0x940] sm:$0xff] }
 0x18d   :  { %v894_v28 = vpop.f32.mrf.mxu1  ;;  %1585 = vmatprep.mubr.f32.mxu0 %v322_v55  ;;  %v583_v55 = vadd.f32 %v2275_v50, %v2400_v47  ;;  %v588_v50 = vadd.f32 %v2279_v58, %v2400_v47  ;;  %v593_v58 = vadd.f32 %v2283_v3, %v2400_v47  ;;  %v598_v3 = vadd.f32 %v2287_v11, %v2400_v47 }
 0x18e   :  { %v734_v6 = vpop.f32.mrf.mxu0  ;;  %v332_v28 = vld [vmem:[#allocation3 + $0x978] sm:$0xff]  ;;  %v603_v11 = vadd.f32 %v2291_v19, %v2400_v47  ;;  %v608_v19 = vadd.f32 %v2295_v27, %v2400_v47  ;;  %v613_v27 = vadd.f32 %v2299_v35, %v2400_v47  ;;  %v618_v35 = vadd.f32 %v2303_v45, %v2400_v47 }
 0x18f   :  { %v962_v61 = vpop.f32.mrf.mxu1  ;;  %1201 = vmatmul.mubr.f32.gmra.mxu1 %v319_v36  ;;  %v623_v45 = vadd.f32 %v2307_v54, %v2400_v47  ;;  %v628_v54 = vadd.f32 %v2311_v1, %v2400_v47  ;;  %v633_v1 = vadd.f32 %v2315_v13, %v2400_v47  ;;  %v638_v13 = vadd.f32 %v2319_v23, %v2400_v47 }
 0x190   :  { %v963_v4 = vadd.f32 %v962_v61, %v578_v62  ;;  %v1347_v21 = vpop.f32.mrf.mxu0  ;;  %1586 = vmatmul.mubr.f32.gmra.mxu0 %v321_v14  ;;  %1205 = vmatprep.mubr.f32.mxu1 %v326_v48  ;;  %v333_v48 = vld [vmem:[#allocation3 + $0x980] sm:$0xff]  ;;  %v338_v62 = vld [vmem:[#allocation3 + $0x9a8] sm:$0xff]  ;;  %v340_v61 = vld [vmem:[#allocation3 + $0x9b8] sm:$0xff]  ;;  %v643_v23 = vadd.f32 %v2323_v33, %v2400_v47  ;;  %v648_v33 = vadd.f32 %v2327_v0, %v2400_v47 }
 0x191   :  { %v964_v38 = vpop.f32.mrf.mxu1  ;;  %1590 = vmatprep.mubr.f32.mxu0 %v328_v29  ;;  %v653_v0 = vadd.f32 %v2331_v60, %v2400_v47 }
 0x192   :  { %v1348_v8 = vadd.f32 %v1347_v21, %v963_v4  ;;  %v1349_v59 = vpop.f32.mrf.mxu0  ;;  %v331_v38 = vld [vmem:[#allocation3 + $0x970] sm:$0xff] }
 0x193   :  { %v967_v6 = vpop.f32.mrf.mxu1  ;;  %1206 = vmatmul.mubr.f32.gmra.mxu1 %v325_v20  ;;  %v337_v20 = vld [vmem:[#allocation3 + $0x9a0] sm:$0xff] }
 0x194   :  { %1667 = vst.msk [vmem:[%s2789_s3] sm:$0xff] %vm1666_vm0, %v1348_v8  ;;  %v968_v36 = vadd.f32 %v967_v6, %v583_v55  ;;  %v1352_v14 = vpop.f32.mrf.mxu0  ;;  %1591 = vmatmul.mubr.f32.gmra.mxu0 %v327_v24  ;;  %1210 = vmatprep.mubr.f32.mxu1 %v332_v28  ;;  %v339_v55 = vld [vmem:[#allocation3 + $0x9b0] sm:$0xff] }
 0x195   :  { %v969_v29 = vpop.f32.mrf.mxu1  ;;  %1595 = vmatprep.mubr.f32.mxu0 %v334_v43  ;;  %v344_v43 = vld [vmem:[#allocation3 + $0x9d8] sm:$0xff] }
 0x196   :  { %v1353_v59 = vadd.f32 %v1352_v14, %v968_v36  ;;  %v1354_v4 = vpop.f32.mrf.mxu0  ;;  %v346_v14 = vld [vmem:[#allocation3 + $0x9e8] sm:$0xff] }
 0x197   :  { %v972_v21 = vpop.f32.mrf.mxu1  ;;  %1211 = vmatmul.mubr.f32.gmra.mxu1 %v331_v38  ;;  %v350_v4 = vld [vmem:[#allocation3 + $0xa08] sm:$0xff] }
 0x198   :  { %1668 = vst.msk [vmem:[%s2789_s3 + $0x8] sm:$0xff] %vm1666_vm0, %v1353_v59  ;;  %v973_v8 = vadd.f32 %v972_v21, %v588_v50  ;;  %v1357_v24 = vpop.f32.mrf.mxu0  ;;  %1596 = vmatmul.mubr.f32.gmra.mxu0 %v333_v48  ;;  %1215 = vmatprep.mubr.f32.mxu1 %v338_v62  ;;  %v343_v62 = vld [vmem:[#allocation3 + $0x9d0] sm:$0xff]  ;;  %v345_v59 = vld [vmem:[#allocation3 + $0x9e0] sm:$0xff] }
 0x199   :  { %v974_v28 = vpop.f32.mrf.mxu1  ;;  %1600 = vmatprep.mubr.f32.mxu0 %v340_v61 }
 0x19a   :  { %v1358_v6 = vadd.f32 %v1357_v24, %v973_v8  ;;  %v1359_v36 = vpop.f32.mrf.mxu0  ;;  %v352_v8 = vld [vmem:[#allocation3 + $0xa18] sm:$0xff] }
 0x19b   :  { %v977_v38 = vpop.f32.mrf.mxu1  ;;  %1216 = vmatmul.mubr.f32.gmra.mxu1 %v337_v20 }
 0x19c   :  { %1669 = vst.msk [vmem:[%s2789_s3 + $0x10] sm:$0xff] %vm1666_vm0, %v1358_v6  ;;  %v978_v29 = vadd.f32 %v977_v38, %v593_v58  ;;  %v1362_v48 = vpop.f32.mrf.mxu0  ;;  %1601 = vmatmul.mubr.f32.gmra.mxu0 %v339_v55  ;;  %1220 = vmatprep.mubr.f32.mxu1 %v344_v43  ;;  %v349_v55 = vld [vmem:[#allocation3 + $0xa00] sm:$0xff]  ;;  %v351_v58 = vld [vmem:[#allocation3 + $0xa10] sm:$0xff]  ;;  %v356_v6 = vld [vmem:[#allocation3 + $0xa38] sm:$0xff] }
 0x19d   :  { %v979_v50 = vpop.f32.mrf.mxu1  ;;  %1605 = vmatprep.mubr.f32.mxu0 %v346_v14  ;;  %v358_v38 = vld [vmem:[#allocation3 + $0xa48] sm:$0xff] }
 0x19e   :  { %v1363_v61 = vadd.f32 %v1362_v48, %v978_v29  ;;  %v1364_v21 = vpop.f32.mrf.mxu0  ;;  %v355_v50 = vld [vmem:[#allocation3 + $0xa30] sm:$0xff] }
 0x19f   :  { %v982_v24 = vpop.f32.mrf.mxu1  ;;  %1221 = vmatmul.mubr.f32.gmra.mxu1 %v343_v62 }
 0x1a0   :  { %1670 = vst.msk [vmem:[%s2789_s3 + $0x18] sm:$0xff] %vm1666_vm0, %v1363_v61  ;;  %v983_v20 = vadd.f32 %v982_v24, %v598_v3  ;;  %v1367_v28 = vpop.f32.mrf.mxu0  ;;  %1606 = vmatmul.mubr.f32.gmra.mxu0 %v345_v59  ;;  %1225 = vmatprep.mubr.f32.mxu1 %v350_v4  ;;  %v357_v4 = vld [vmem:[#allocation3 + $0xa40] sm:$0xff]  ;;  %v362_v3 = vld [vmem:[#allocation3 + $0xa68] sm:$0xff] }
 0x1a1   :  { %v984_v43 = vpop.f32.mrf.mxu1  ;;  %1610 = vmatprep.mubr.f32.mxu0 %v352_v8  ;;  %v364_v8 = vld [vmem:[#allocation3 + $0xa78] sm:$0xff] }
 0x1a2   :  { %v1368_v36 = vadd.f32 %v1367_v28, %v983_v20  ;;  %v1369_v14 = vpop.f32.mrf.mxu0 }
 0x1a3   :  { %v987_v29 = vpop.f32.mrf.mxu1  ;;  %1226 = vmatmul.mubr.f32.gmra.mxu1 %v349_v55  ;;  %v361_v55 = vld [vmem:[#allocation3 + $0xa60] sm:$0xff]  ;;  %v370_v14 = vld [vmem:[#allocation3 + $0xaa8] sm:$0xff] }
 0x1a4   :  { %1671 = vst.msk [vmem:[%s2789_s3 + $0x20] sm:$0xff] %vm1666_vm0, %v1368_v36  ;;  %v988_v48 = vadd.f32 %v987_v29, %v603_v11  ;;  %v1372_v62 = vpop.f32.mrf.mxu0  ;;  %1611 = vmatmul.mubr.f32.gmra.mxu0 %v351_v58  ;;  %1230 = vmatprep.mubr.f32.mxu1 %v356_v6  ;;  %v363_v58 = vld [vmem:[#allocation3 + $0xa70] sm:$0xff]  ;;  %v368_v6 = vld [vmem:[#allocation3 + $0xa98] sm:$0xff] }
 0x1a5   :  { %v989_v59 = vpop.f32.mrf.mxu1  ;;  %1615 = vmatprep.mubr.f32.mxu0 %v358_v38 }
 0x1a6   :  { %v1373_v61 = vadd.f32 %v1372_v62, %v988_v48  ;;  %v1374_v21 = vpop.f32.mrf.mxu0  ;;  %v367_v62 = vld [vmem:[#allocation3 + $0xa90] sm:$0xff]  ;;  %v369_v59 = vld [vmem:[#allocation3 + $0xaa0] sm:$0xff] }
 0x1a7   :  { %v992_v24 = vpop.f32.mrf.mxu1  ;;  %1231 = vmatmul.mubr.f32.gmra.mxu1 %v355_v50 }
 0x1a8   :  { %1672 = vst.msk [vmem:[%s2789_s3 + $0x28] sm:$0xff] %vm1666_vm0, %v1373_v61  ;;  %v993_v20 = vadd.f32 %v992_v24, %v608_v19  ;;  %v1377_v28 = vpop.f32.mrf.mxu0  ;;  %1616 = vmatmul.mubr.f32.gmra.mxu0 %v357_v4  ;;  %1235 = vmatprep.mubr.f32.mxu1 %v362_v3  ;;  %v374_v4 = vld [vmem:[#allocation3 + $0xac8] sm:$0xff]  ;;  %v376_v61 = vld [vmem:[#allocation3 + $0xad8] sm:$0xff] }
 0x1a9   :  { %v994_v43 = vpop.f32.mrf.mxu1  ;;  %1620 = vmatprep.mubr.f32.mxu0 %v364_v8 }
 0x1aa   :  { %v1378_v11 = vadd.f32 %v1377_v28, %v993_v20  ;;  %v1379_v36 = vpop.f32.mrf.mxu0  ;;  %v373_v20 = vld [vmem:[#allocation3 + $0xac0] sm:$0xff]  ;;  %v380_v43 = vld [vmem:[#allocation3 + $0xaf8] sm:$0xff] }
 0x1ab   :  { %v997_v38 = vpop.f32.mrf.mxu1  ;;  %1236 = vmatmul.mubr.f32.gmra.mxu1 %v361_v55  ;;  %v375_v55 = vld [vmem:[#allocation3 + $0xad0] sm:$0xff] }
 0x1ac   :  { %1673 = vst.msk [vmem:[%s2789_s3 + $0x30] sm:$0xff] %vm1666_vm0, %v1378_v11  ;;  %v998_v29 = vadd.f32 %v997_v38, %v613_v27  ;;  %v1382_v48 = vpop.f32.mrf.mxu0  ;;  %1621 = vmatmul.mubr.f32.gmra.mxu0 %v363_v58  ;;  %1240 = vmatprep.mubr.f32.mxu1 %v368_v6  ;;  %v382_v27 = vld [vmem:[#allocation3 + $0xb08] sm:$0xff]  ;;  %v379_v38 = vld [vmem:[#allocation3 + $0xaf0] sm:$0xff] }
 0x1ad   :  { %v999_v50 = vpop.f32.mrf.mxu1  ;;  %1625 = vmatprep.mubr.f32.mxu0 %v370_v14 }
 0x1ae   :  { %v1383_v3 = vadd.f32 %v1382_v48, %v998_v29  ;;  %v1384_v19 = vpop.f32.mrf.mxu0  ;;  %v381_v48 = vld [vmem:[#allocation3 + $0xb00] sm:$0xff] }
 0x1af   :  { %v1002_v21 = vpop.f32.mrf.mxu1  ;;  %1241 = vmatmul.mubr.f32.gmra.mxu1 %v367_v62  ;;  %v386_v62 = vld [vmem:[#allocation3 + $0xb28] sm:$0xff] }
 0x1b0   :  { %1674 = vst.msk [vmem:[%s2789_s3 + $0x38] sm:$0xff] %vm1666_vm0, %v1383_v3  ;;  %v1003_v8 = vadd.f32 %v1002_v21, %v618_v35  ;;  %v1387_v24 = vpop.f32.mrf.mxu0  ;;  %1626 = vmatmul.mubr.f32.gmra.mxu0 %v369_v59  ;;  %1245 = vmatprep.mubr.f32.mxu1 %v374_v4  ;;  %v388_v4 = vld [vmem:[#allocation3 + $0xb38] sm:$0xff] }
 0x1b1   :  { %v1004_v28 = vpop.f32.mrf.mxu1  ;;  %1630 = vmatprep.mubr.f32.mxu0 %v376_v61  ;;  %v385_v61 = vld [vmem:[#allocation3 + $0xb20] sm:$0xff] }
 0x1b2   :  { %v1388_v58 = vadd.f32 %v1387_v24, %v1003_v8  ;;  %v1389_v6 = vpop.f32.mrf.mxu0  ;;  %v387_v8 = vld [vmem:[#allocation3 + $0xb30] sm:$0xff]  ;;  %v392_v24 = vld [vmem:[#allocation3 + $0xb58] sm:$0xff] }
 0x1b3   :  { %v1007_v11 = vpop.f32.mrf.mxu1  ;;  %1246 = vmatmul.mubr.f32.gmra.mxu1 %v373_v20  ;;  %v391_v6 = vld [vmem:[#allocation3 + $0xb50] sm:$0xff] }
 0x1b4   :  { %1675 = vst.msk [vmem:[%s2789_s3 + $0x40] sm:$0xff] %vm1666_vm0, %v1388_v58  ;;  %v1008_v36 = vadd.f32 %v1007_v11, %v623_v45  ;;  %v1392_v14 = vpop.f32.mrf.mxu0  ;;  %1631 = vmatmul.mubr.f32.gmra.mxu0 %v375_v55  ;;  %1250 = vmatprep.mubr.f32.mxu1 %v380_v43  ;;  %v394_v55 = vld [vmem:[#allocation3 + $0xb68] sm:$0xff]  ;;  %v393_v11 = vld [vmem:[#allocation3 + $0xb60] sm:$0xff] }
 0x1b5   :  { %v1009_v29 = vpop.f32.mrf.mxu1  ;;  %1635 = vmatprep.mubr.f32.mxu0 %v382_v27 }
 0x1b6   :  { %v1393_v50 = vadd.f32 %v1392_v14, %v1008_v36  ;;  %v1394_v59 = vpop.f32.mrf.mxu0  ;;  %v398_v36 = vld [vmem:[#allocation3 + $0xb88] sm:$0xff]  ;;  %v400_v29 = vld [vmem:[#allocation3 + $0xb98] sm:$0xff] }
 0x1b7   :  { %v1012_v35 = vpop.f32.mrf.mxu1  ;;  %1251 = vmatmul.mubr.f32.gmra.mxu1 %v379_v38 }
 0x1b8   :  { %1676 = vst.msk [vmem:[%s2789_s3 + $0x48] sm:$0xff] %vm1666_vm0, %v1393_v50  ;;  %v1013_v3 = vadd.f32 %v1012_v35, %v628_v54  ;;  %v1397_v19 = vpop.f32.mrf.mxu0  ;;  %1636 = vmatmul.mubr.f32.gmra.mxu0 %v381_v48  ;;  %1255 = vmatprep.mubr.f32.mxu1 %v386_v62  ;;  %v397_v50 = vld [vmem:[#allocation3 + $0xb80] sm:$0xff]  ;;  %v404_v35 = vld [vmem:[#allocation3 + $0xbb8] sm:$0xff] }
 0x1b9   :  { %v1014_v21 = vpop.f32.mrf.mxu1  ;;  %1640 = vmatprep.mubr.f32.mxu0 %v388_v4  ;;  %v399_v4 = vld [vmem:[#allocation3 + $0xb90] sm:$0xff] }
 0x1ba   :  { %v1398_v20 = vadd.f32 %v1397_v19, %v1013_v3  ;;  %v1399_v28 = vpop.f32.mrf.mxu0 }
 0x1bb   :  { %v1017_v43 = vpop.f32.mrf.mxu1  ;;  %1256 = vmatmul.mubr.f32.gmra.mxu1 %v385_v61  ;;  %v406_v61 = vld [vmem:[#allocation3 + $0xbc8] sm:$0xff]  ;;  %v405_v28 = vld [vmem:[#allocation3 + $0xbc0] sm:$0xff] }
 0x1bc   :  { %1677 = vst.msk [vmem:[%s2789_s3 + $0x50] sm:$0xff] %vm1666_vm0, %v1398_v20  ;;  %v1018_v45 = vadd.f32 %v1017_v43, %v633_v1  ;;  %v1402_v58 = vpop.f32.mrf.mxu0  ;;  %1641 = vmatmul.mubr.f32.gmra.mxu0 %v387_v8  ;;  %1260 = vmatprep.mubr.f32.mxu1 %v392_v24  ;;  %v403_v1 = vld [vmem:[#allocation3 + $0xbb0] sm:$0xff] }
 0x1bd   :  { %v1019_v27 = vpop.f32.mrf.mxu1  ;;  %1645 = vmatprep.mubr.f32.mxu0 %v394_v55  ;;  %v410_v55 = vld [vmem:[#allocation3 + $0xbe8] sm:$0xff] }
 0x1be   :  { %v1403_v14 = vadd.f32 %v1402_v58, %v1018_v45  ;;  %v1404_v38 = vpop.f32.mrf.mxu0  ;;  %v412_v58 = vld [vmem:[#allocation3 + $0xbf8] sm:$0xff] }
 0x1bf   :  { %v1022_v48 = vpop.f32.mrf.mxu1  ;;  %1261 = vmatmul.mubr.f32.gmra.mxu1 %v391_v6 }
 0x1c0   :  { %1678 = vst.msk [vmem:[%s2789_s3 + $0x58] sm:$0xff] %vm1666_vm0, %v1403_v14  ;;  %v1023_v62 = vadd.f32 %v1022_v48, %v638_v13  ;;  %v1407_v54 = vpop.f32.mrf.mxu0  ;;  %1646 = vmatmul.mubr.f32.gmra.mxu0 %v393_v11  ;;  %1265 = vmatprep.mubr.f32.mxu1 %v398_v36  ;;  %v409_v36 = vld [vmem:[#allocation3 + $0xbe0] sm:$0xff]  ;;  %v411_v14 = vld [vmem:[#allocation3 + $0xbf0] sm:$0xff] }
 0x1c1   :  { %v1024_v59 = vpop.f32.mrf.mxu1  ;;  %1650 = vmatprep.mubr.f32.mxu0 %v400_v29 }
 0x1c2   :  { %v1408_v3 = vadd.f32 %v1407_v54, %v1023_v62  ;;  %v1409_v19 = vpop.f32.mrf.mxu0  ;;  %v658_v59 = vadd.f32 %v2335_v9, %v2400_v47 }
 0x1c3   :  { %v1027_v21 = vpop.f32.mrf.mxu1  ;;  %1266 = vmatmul.mubr.f32.gmra.mxu1 %v397_v50 }
 0x1c4   :  { %1679 = vst.msk [vmem:[%s2789_s3 + $0x60] sm:$0xff] %vm1666_vm0, %v1408_v3  ;;  %v1028_v8 = vadd.f32 %v1027_v21, %v643_v23  ;;  %v1412_v24 = vpop.f32.mrf.mxu0  ;;  %1651 = vmatmul.mubr.f32.gmra.mxu0 %v399_v4  ;;  %1270 = vmatprep.mubr.f32.mxu1 %v404_v35 }
 0x1c5   :  { %v1029_v20 = vpop.f32.mrf.mxu1  ;;  %1655 = vmatprep.mubr.f32.mxu0 %v406_v61  ;;  %v663_v61 = vadd.f32 %v2339_v25, %v2400_v47 }
 0x1c6   :  { %v1413_v43 = vadd.f32 %v1412_v24, %v1028_v8  ;;  %v1414_v45 = vpop.f32.mrf.mxu0 }
 0x1c7   :  { %v1032_v6 = vpop.f32.mrf.mxu1  ;;  %1271 = vmatmul.mubr.f32.gmra.mxu1 %v403_v1 }
 0x1c8   :  { %1680 = vst.msk [vmem:[%s2789_s3 + $0x68] sm:$0xff] %vm1666_vm0, %v1413_v43  ;;  %v1033_v27 = vadd.f32 %v1032_v6, %v648_v33  ;;  %v1417_v11 = vpop.f32.mrf.mxu0  ;;  %1656 = vmatmul.mubr.f32.gmra.mxu0 %v405_v28  ;;  %1275 = vmatprep.mubr.f32.mxu1 %v410_v55  ;;  %v668_v28 = vadd.f32 %v2343_v39, %v2400_v47 }
 0x1c9   :  { %v1034_v13 = vpop.f32.mrf.mxu1  ;;  %1660 = vmatprep.mubr.f32.mxu0 %v412_v58  ;;  %v673_v6 = vadd.f32 %v2347_v56, %v2400_v47 }
 0x1ca   :  { %v1418_v38 = vadd.f32 %v1417_v11, %v1033_v27  ;;  %v1419_v29 = vpop.f32.mrf.mxu0 }
 0x1cb   :  { %v1037_v48 = vpop.f32.mrf.mxu1  ;;  %1276 = vmatmul.mubr.f32.gmra.mxu1 %v409_v36 }
 0x1cc   :  { %1681 = vst.msk [vmem:[%s2789_s3 + $0x70] sm:$0xff] %vm1666_vm0, %v1418_v38  ;;  %v1038_v62 = vadd.f32 %v1037_v48, %v653_v0  ;;  %v1422_v54 = vpop.f32.mrf.mxu0  ;;  %1661 = vmatmul.mubr.f32.gmra.mxu0 %v411_v14  ;;  %v678_v0 = vadd.f32 %v2351_v15, %v2400_v47 }
 0x1cd   :  { %v1039_v50 = vpop.f32.mrf.mxu1 }
 0x1ce   :  { %v1423_v4 = vadd.f32 %v1422_v54, %v1038_v62  ;;  %v1424_v35 = vpop.f32.mrf.mxu0  ;;  %v683_v50 = vadd.f32 %v2355_v31, %v2400_v47 }
 0x1cf   :  { %v1042_v23 = vpop.f32.mrf.mxu1 }
 0x1d0   :  { %1682 = vst.msk [vmem:[%s2789_s3 + $0x78] sm:$0xff] %vm1666_vm0, %v1423_v4  ;;  %v1043_v60 = vadd.f32 %v1042_v23, %v658_v59  ;;  %v1427_v3 = vpop.f32.mrf.mxu0 }
 0x1d1   :  { %v1044_v19 = vpop.f32.mrf.mxu1 }
 0x1d2   :  { %v1428_v21 = vadd.f32 %v1427_v3, %v1043_v60  ;;  %v1429_v8 = vpop.f32.mrf.mxu0  ;;  %v688_v3 = vadd.f32 %v2359_v52, %v2400_v47 }
 0x1d3   :  { %v1047_v24 = vpop.f32.mrf.mxu1 }
 0x1d4   :  { %1683 = vst.msk [vmem:[%s2789_s3 + $0x80] sm:$0xff] %vm1666_vm0, %v1428_v21  ;;  %v1048_v9 = vadd.f32 %v1047_v24, %v663_v61  ;;  %v1432_v1 = vpop.f32.mrf.mxu0 }
 0x1d5   :  { %v1049_v20 = vpop.f32.mrf.mxu1 }
 0x1d6   :  { %v1433_v55 = vadd.f32 %v1432_v1, %v1048_v9  ;;  %v1434_v33 = vpop.f32.mrf.mxu0  ;;  %v693_v9 = vadd.f32 %v2363_v17, %v2400_v47 }
 0x1d7   :  { %v1052_v43 = vpop.f32.mrf.mxu1 }
 0x1d8   :  { %1684 = vst.msk [vmem:[%s2789_s3 + $0x88] sm:$0xff] %vm1666_vm0, %v1433_v55  ;;  %v1053_v25 = vadd.f32 %v1052_v43, %v668_v28  ;;  %v1437_v45 = vpop.f32.mrf.mxu0  ;;  %v698_v43 = vadd.f32 %v2367_v41, %v2400_v47 }
 0x1d9   :  { %v1054_v58 = vpop.f32.mrf.mxu1 }
 0x1da   :  { %v1438_v27 = vadd.f32 %v1437_v45, %v1053_v25  ;;  %v1439_v11 = vpop.f32.mrf.mxu0 }
 0x1db   :  { %v1057_v36 = vpop.f32.mrf.mxu1  ;;  %v703_v11 = vadd.f32 %v2371_v7, %v2400_v47 }
 0x1dc   :  { %1685 = vst.msk [vmem:[%s2789_s3 + $0x90] sm:$0xff] %vm1666_vm0, %v1438_v27  ;;  %v1058_v39 = vadd.f32 %v1057_v36, %v673_v6  ;;  %v1442_v13 = vpop.f32.mrf.mxu0 }
 0x1dd   :  { %v1059_v14 = vpop.f32.mrf.mxu1 }
 0x1de   :  { %v1443_v38 = vadd.f32 %v1442_v13, %v1058_v39  ;;  %v1444_v29 = vpop.f32.mrf.mxu0 }
 0x1df   :  { %v1062_v48 = vpop.f32.mrf.mxu1 }
 0x1e0   :  { %1686 = vst.msk [vmem:[%s2789_s3 + $0x98] sm:$0xff] %vm1666_vm0, %v1443_v38  ;;  %v1063_v56 = vadd.f32 %v1062_v48, %v678_v0  ;;  %v1447_v62 = vpop.f32.mrf.mxu0  ;;  %v708_v38 = vadd.f32 %v2375_v37, %v2400_v47 }
 0x1e1   :  { %v1064_v54 = vpop.f32.mrf.mxu1 }
 0x1e2   :  { %v1448_v59 = vadd.f32 %v1447_v62, %v1063_v56  ;;  %v1449_v4 = vpop.f32.mrf.mxu0 }
 0x1e3   :  { %v1067_v35 = vpop.f32.mrf.mxu1 }
 0x1e4   :  { %1687 = vst.msk [vmem:[%s2789_s3 + $0xa0] sm:$0xff] %vm1666_vm0, %v1448_v59  ;;  %v1068_v15 = vadd.f32 %v1067_v35, %v683_v50  ;;  %v1452_v23 = vpop.f32.mrf.mxu0  ;;  %v713_v50 = vadd.f32 %v2379_v5, %v2400_v47 }
 0x1e5   :  { %v1069_v60 = vpop.f32.mrf.mxu1 }
 0x1e6   :  { %v1453_v19 = vadd.f32 %v1452_v23, %v1068_v15  ;;  %v1454_v61 = vpop.f32.mrf.mxu0  ;;  %v718_v60 = vadd.f32 %v2383_v40, %v2400_v47 }
 0x1e7   :  { %v1072_v21 = vpop.f32.mrf.mxu1 }
 0x1e8   :  { %1688 = vst.msk [vmem:[%s2789_s3 + $0xa8] sm:$0xff] %vm1666_vm0, %v1453_v19  ;;  %v1073_v31 = vadd.f32 %v1072_v21, %v688_v3  ;;  %v1457_v8 = vpop.f32.mrf.mxu0 }
 0x1e9   :  { %v1074_v24 = vpop.f32.mrf.mxu1 }
 0x1ea   :  { %v1458_v1 = vadd.f32 %v1457_v8, %v1073_v31  ;;  %v1459_v20 = vpop.f32.mrf.mxu0  ;;  %v723_v8 = vadd.f32 %v2387_v16, %v2400_v47 }
 0x1eb   :  { %v1077_v28 = vpop.f32.mrf.mxu1 }
 0x1ec   :  { %1689 = vst.msk [vmem:[%s2789_s3 + $0xb0] sm:$0xff] %vm1666_vm0, %v1458_v1  ;;  %v1078_v52 = vadd.f32 %v1077_v28, %v693_v9  ;;  %v1462_v55 = vpop.f32.mrf.mxu0 }
 0x1ed   :  { %v1079_v33 = vpop.f32.mrf.mxu1 }
 0x1ee   :  { %v1463_v25 = vadd.f32 %v1462_v55, %v1078_v52  ;;  %v1464_v45 = vpop.f32.mrf.mxu0  ;;  %v728_v52 = vadd.f32 %v2391_v51, %v2400_v47 }
 0x1ef   :  { %v1082_v58 = vpop.f32.mrf.mxu1 }
 0x1f0   :  { %1690 = vst.msk [vmem:[%s2789_s3 + $0xb8] sm:$0xff] %vm1666_vm0, %v1463_v25  ;;  %v1083_v17 = vadd.f32 %v1082_v58, %v698_v43  ;;  %v1467_v6 = vpop.f32.mrf.mxu0  ;;  %v733_v58 = vadd.f32 %v2395_v30, %v2400_v47 }
 0x1f1   :  { %v1084_v27 = vpop.f32.mrf.mxu1 }
 0x1f2   :  { %v1468_v36 = vadd.f32 %v1467_v6, %v1083_v17  ;;  %v1469_v39 = vpop.f32.mrf.mxu0 }
 0x1f3   :  { %v1087_v13 = vpop.f32.mrf.mxu1  ;;  %v738_v39 = vadd.f32 %v2269_v42, %v2400_v47 }
 0x1f4   :  { %1691 = vst.msk [vmem:[%s2789_s3 + $0xc0] sm:$0xff] %vm1666_vm0, %v1468_v36  ;;  %v1088_v41 = vadd.f32 %v1087_v13, %v703_v11  ;;  %v1472_v14 = vpop.f32.mrf.mxu0 }
 0x1f5   :  { %v1089_v0 = vpop.f32.mrf.mxu1 }
 0x1f6   :  { %v1473_v29 = vadd.f32 %v1472_v14, %v1088_v41  ;;  %v1474_v48 = vpop.f32.mrf.mxu0 }
 0x1f7   :  { %v1092_v56 = vpop.f32.mrf.mxu1 }
 0x1f8   :  { %1692 = vst.msk [vmem:[%s2789_s3 + $0xc8] sm:$0xff] %vm1666_vm0, %v1473_v29  ;;  %v1093_v7 = vadd.f32 %v1092_v56, %v708_v38  ;;  %v1477_v62 = vpop.f32.mrf.mxu0  ;;  %v743_v29 = vadd.f32 %v2273_v49, %v2400_v47 }
 0x1f9   :  { %v1094_v54 = vpop.f32.mrf.mxu1 }
 0x1fa   :  { %v1478_v59 = vadd.f32 %v1477_v62, %v1093_v7  ;;  %v1479_v4 = vpop.f32.mrf.mxu0 }
 0x1fb   :  { %v1097_v35 = vpop.f32.mrf.mxu1 }
 0x1fc   :  { %1693 = vst.msk [vmem:[%s2789_s3 + $0xd0] sm:$0xff] %vm1666_vm0, %v1478_v59  ;;  %v1098_v37 = vadd.f32 %v1097_v35, %v713_v50  ;;  %v1482_v15 = vpop.f32.mrf.mxu0  ;;  %v748_v50 = vadd.f32 %v2277_v57, %v2400_v47 }
 0x1fd   :  { %v1099_v23 = vpop.f32.mrf.mxu1 }
 0x1fe   :  { %v1483_v3 = vadd.f32 %v1482_v15, %v1098_v37  ;;  %v1484_v19 = vpop.f32.mrf.mxu0  ;;  %v753_v23 = vadd.f32 %v2281_v2, %v2400_v47 }
 0x1ff   :  { %v1102_v61 = vpop.f32.mrf.mxu1 }
 0x200   :  { %1694 = vst.msk [vmem:[%s2789_s3 + $0xd8] sm:$0xff] %vm1666_vm0, %v1483_v3  ;;  %v1103_v5 = vadd.f32 %v1102_v61, %v718_v60  ;;  %v1487_v21 = vpop.f32.mrf.mxu0 }
 0x201   :  { %v1104_v31 = vpop.f32.mrf.mxu1 }
 0x202   :  { %v1488_v24 = vadd.f32 %v1487_v21, %v1103_v5  ;;  %v1489_v9 = vpop.f32.mrf.mxu0  ;;  %v758_v21 = vadd.f32 %v2285_v10, %v2400_v47 }
 0x203   :  { %v1107_v1 = vpop.f32.mrf.mxu1 }
 0x204   :  { %1695 = vst.msk [vmem:[%s2789_s3 + $0xe0] sm:$0xff] %vm1666_vm0, %v1488_v24  ;;  %v1108_v40 = vadd.f32 %v1107_v1, %v723_v8  ;;  %v1492_v20 = vpop.f32.mrf.mxu0 }
 0x205   :  { %v1109_v28 = vpop.f32.mrf.mxu1 }
 0x206   :  { %v1493_v55 = vadd.f32 %v1492_v20, %v1108_v40  ;;  %v1494_v33 = vpop.f32.mrf.mxu0  ;;  %v763_v40 = vadd.f32 %v2289_v18, %v2400_v47 }
 0x207   :  { %v1112_v43 = vpop.f32.mrf.mxu1 }
 0x208   :  { %1696 = vst.msk [vmem:[%s2789_s3 + $0xe8] sm:$0xff] %vm1666_vm0, %v1493_v55  ;;  %v1113_v16 = vadd.f32 %v1112_v43, %v728_v52  ;;  %v1497_v25 = vpop.f32.mrf.mxu0  ;;  %v768_v43 = vadd.f32 %v2293_v26, %v2400_v47 }
 0x209   :  { %v1114_v45 = vpop.f32.mrf.mxu1 }
 0x20a   :  { %v1498_v17 = vadd.f32 %v1497_v25, %v1113_v16  ;;  %v1499_v6 = vpop.f32.mrf.mxu0 }
 0x20b   :  { %v1117_v27 = vpop.f32.mrf.mxu1  ;;  %v773_v6 = vadd.f32 %v2297_v34, %v2400_v47 }
 0x20c   :  { %1697 = vst.msk [vmem:[%s2789_s3 + $0xf0] sm:$0xff] %vm1666_vm0, %v1498_v17  ;;  %v1118_v51 = vadd.f32 %v1117_v27, %v733_v58  ;;  %v1502_v11 = vpop.f32.mrf.mxu0 }
 0x20d   :  { %v1119_v36 = vpop.f32.mrf.mxu1 }
 0x20e   :  { %v1503_v13 = vadd.f32 %v1502_v11, %v1118_v51  ;;  %v1504_v41 = vpop.f32.mrf.mxu0 }
 0x20f   :  { %v1122_v14 = vpop.f32.mrf.mxu1 }
 0x210   :  { %1698 = vst.msk [vmem:[%s2789_s3 + $0xf8] sm:$0xff] %vm1666_vm0, %v1503_v13  ;;  %v1123_v30 = vadd.f32 %v1122_v14, %v738_v39  ;;  %v1507_v0 = vpop.f32.mrf.mxu0  ;;  %v778_v13 = vadd.f32 %v2301_v44, %v2400_v47 }
 0x211   :  { %v1124_v38 = vpop.f32.mrf.mxu1 }
 0x212   :  { %v1508_v48 = vadd.f32 %v1507_v0, %v1123_v30  ;;  %v1509_v56 = vpop.f32.mrf.mxu0 }
 0x213   :  { %v1127_v7 = vpop.f32.mrf.mxu1 }
 0x214   :  { %1699 = vst.msk [vmem:[%s2789_s3 + $0x100] sm:$0xff] %vm1666_vm0, %v1508_v48  ;;  %v1128_v42 = vadd.f32 %v1127_v7, %v743_v29  ;;  %v1512_v62 = vpop.f32.mrf.mxu0  ;;  %v783_v29 = vadd.f32 %v2305_v53, %v2400_v47 }
 0x215   :  { %v1129_v54 = vpop.f32.mrf.mxu1 }
 0x216   :  { %v1513_v59 = vadd.f32 %v1512_v62, %v1128_v42  ;;  %v1514_v4 = vpop.f32.mrf.mxu0  ;;  %v788_v54 = vadd.f32 %v2309_v63, %v2400_v47 }
 0x217   :  { %v1132_v35 = vpop.f32.mrf.mxu1 }
 0x218   :  { %1700 = vst.msk [vmem:[%s2789_s3 + $0x108] sm:$0xff] %vm1666_vm0, %v1513_v59  ;;  %v1133_v49 = vadd.f32 %v1132_v35, %v748_v50  ;;  %v1517_v37 = vpop.f32.mrf.mxu0 }
 0x219   :  { %v1134_v15 = vpop.f32.mrf.mxu1 }
 0x21a   :  { %v1518_v60 = vadd.f32 %v1517_v37, %v1133_v49  ;;  %v1519_v3 = vpop.f32.mrf.mxu0  ;;  %v793_v37 = vadd.f32 %v2313_v12, %v2400_v47 }
 0x21b   :  { %v1137_v19 = vpop.f32.mrf.mxu1 }
 0x21c   :  { %1701 = vst.msk [vmem:[%s2789_s3 + $0x110] sm:$0xff] %vm1666_vm0, %v1518_v60  ;;  %v1138_v57 = vadd.f32 %v1137_v19, %v753_v23  ;;  %v1522_v61 = vpop.f32.mrf.mxu0 }
 0x21d   :  { %v1139_v5 = vpop.f32.mrf.mxu1 }
 0x21e   :  { %v1523_v31 = vadd.f32 %v1522_v61, %v1138_v57  ;;  %v1524_v8 = vpop.f32.mrf.mxu0  ;;  %v798_v57 = vadd.f32 %v2317_v22, %v2400_v47 }
 0x21f   :  { %v1142_v24 = vpop.f32.mrf.mxu1 }
 0x220   :  { %1702 = vst.msk [vmem:[%s2789_s3 + $0x118] sm:$0xff] %vm1666_vm0, %v1523_v31  ;;  %v1143_v2 = vadd.f32 %v1142_v24, %v758_v21  ;;  %v1527_v9 = vpop.f32.mrf.mxu0  ;;  %v803_v24 = vadd.f32 %v2321_v32, %v2400_v47 }
 0x221   :  { %v1144_v1 = vpop.f32.mrf.mxu1 }
 0x222   :  { %v1528_v20 = vadd.f32 %v1527_v9, %v1143_v2  ;;  %v1529_v28 = vpop.f32.mrf.mxu0 }
 0x223   :  { %v1147_v52 = vpop.f32.mrf.mxu1  ;;  %v808_v28 = vadd.f32 %v2325_v46, %v2400_v47 }
 0x224   :  { %1703 = vst.msk [vmem:[%s2789_s3 + $0x120] sm:$0xff] %vm1666_vm0, %v1528_v20  ;;  %v1148_v10 = vadd.f32 %v1147_v52, %v763_v40  ;;  %v1532_v55 = vpop.f32.mrf.mxu0 }
 0x225   :  { %v1149_v33 = vpop.f32.mrf.mxu1 }
 0x226   :  { %v1533_v16 = vadd.f32 %v1532_v55, %v1148_v10  ;;  %v1534_v25 = vpop.f32.mrf.mxu0 }
 0x227   :  { %v1152_v45 = vpop.f32.mrf.mxu1 }
 0x228   :  { %1704 = vst.msk [vmem:[%s2789_s3 + $0x128] sm:$0xff] %vm1666_vm0, %v1533_v16  ;;  %v1153_v18 = vadd.f32 %v1152_v45, %v768_v43  ;;  %v1537_v58 = vpop.f32.mrf.mxu0  ;;  %v2807_v16 = vld [vmem:[#allocation6_spill] sm:$0xff] }
 0x229   :  { %v1154_v17 = vpop.f32.mrf.mxu1  ;;  %v813_v25 = vadd.f32 %v2807_v16, %v2400_v47 }
 0x22a   :  { %v1538_v27 = vadd.f32 %v1537_v58, %v1153_v18  ;;  %v1539_v51 = vpop.f32.mrf.mxu0 }
 0x22b   :  { %v1157_v11 = vpop.f32.mrf.mxu1 }
 0x22c   :  { %1705 = vst.msk [vmem:[%s2789_s3 + $0x130] sm:$0xff] %vm1666_vm0, %v1538_v27  ;;  %v1158_v26 = vadd.f32 %v1157_v11, %v773_v6  ;;  %v1542_v36 = vpop.f32.mrf.mxu0  ;;  %v2808_v27 = vld [vmem:[#allocation7_spill] sm:$0xff] }
 0x22d   :  { %v1159_v39 = vpop.f32.mrf.mxu1  ;;  %v818_v51 = vadd.f32 %v2808_v27, %v2400_v47 }
 0x22e   :  { %v1543_v41 = vadd.f32 %v1542_v36, %v1158_v26  ;;  %v1544_v14 = vpop.f32.mrf.mxu0 }
 0x22f   :  { %v1162_v30 = vpop.f32.mrf.mxu1  ;;  %v2809_v14 = vld [vmem:[#allocation8_spill] sm:$0xff] }
 0x230   :  { %1706 = vst.msk [vmem:[%s2789_s3 + $0x138] sm:$0xff] %vm1666_vm0, %v1543_v41  ;;  %v1163_v34 = vadd.f32 %v1162_v30, %v778_v13  ;;  %v1547_v0 = vpop.f32.mrf.mxu0  ;;  %v823_v30 = vadd.f32 %v2809_v14, %v2400_v47 }
 0x231   :  { %v1164_v38 = vpop.f32.mrf.mxu1 }
 0x232   :  { %v1548_v48 = vadd.f32 %v1547_v0, %v1163_v34  ;;  %v1549_v56 = vpop.f32.mrf.mxu0 }
 0x233   :  { %v1167_v7 = vpop.f32.mrf.mxu1 }
 0x234   :  { %1707 = vst.msk [vmem:[%s2789_s3 + $0x140] sm:$0xff] %vm1666_vm0, %v1548_v48  ;;  %v1168_v44 = vadd.f32 %v1167_v7, %v783_v29  ;;  %v1552_v42 = vpop.f32.mrf.mxu0  ;;  %v2810_v7 = vld [vmem:[#allocation9_spill] sm:$0xff] }
 0x235   :  { %v1169_v62 = vpop.f32.mrf.mxu1 }
 0x236   :  { %v1553_v50 = vadd.f32 %v1552_v42, %v1168_v44  ;;  %v1554_v59 = vpop.f32.mrf.mxu0  ;;  %v828_v44 = vadd.f32 %v2810_v7, %v2400_v47 }
 0x237   :  { %v1172_v4 = vpop.f32.mrf.mxu1 }
 0x238   :  { %1708 = vst.msk [vmem:[%s2789_s3 + $0x148] sm:$0xff] %vm1666_vm0, %v1553_v50  ;;  %v1173_v53 = vadd.f32 %v1172_v4, %v788_v54  ;;  %v1557_v35 = vpop.f32.mrf.mxu0 }
 0x239   :  { %v1174_v49 = vpop.f32.mrf.mxu1 }
 0x23a   :  { %v1558_v15 = vadd.f32 %v1557_v35, %v1173_v53  ;;  %v1559_v23 = vpop.f32.mrf.mxu0  ;;  %v2811_v53 = vld [vmem:[#allocation10_spill] sm:$0xff] }
 0x23b   :  { %v1177_v60 = vpop.f32.mrf.mxu1  ;;  %v833_v35 = vadd.f32 %v2811_v53, %v2400_v47 }
 0x23c   :  { %1709 = vst.msk [vmem:[%s2789_s3 + $0x150] sm:$0xff] %vm1666_vm0, %v1558_v15  ;;  %v1178_v63 = vadd.f32 %v1177_v60, %v793_v37  ;;  %v1562_v3 = vpop.f32.mrf.mxu0 }
 0x23d   :  { %v1179_v19 = vpop.f32.mrf.mxu1 }
 0x23e   :  { %v1563_v61 = vadd.f32 %v1562_v3, %v1178_v63  ;;  %v1564_v5 = vpop.f32.mrf.mxu0  ;;  %v2812_v3 = vld [vmem:[#allocation11_spill] sm:$0xff] }
 0x23f   :  { %v1182_v21 = vpop.f32.mrf.mxu1  ;;  %v838_v19 = vadd.f32 %v2812_v3, %v2400_v47 }
 0x240   :  { %1710 = vst.msk [vmem:[%s2789_s3 + $0x158] sm:$0xff] %vm1666_vm0, %v1563_v61  ;;  %v1183_v12 = vadd.f32 %v1182_v21, %v798_v57  ;;  %v1567_v31 = vpop.f32.mrf.mxu0 }
 0x241   :  { %v1184_v8 = vpop.f32.mrf.mxu1 }
 0x242   :  { %v1568_v2 = vadd.f32 %v1567_v31, %v1183_v12  ;;  %v1569_v9 = vpop.f32.mrf.mxu0  ;;  %v2813_v8 = vld [vmem:[#allocation12_spill] sm:$0xff] }
 0x243   :  { %v1187_v1 = vpop.f32.mrf.mxu1 }
 0x244   :  { %1711 = vst.msk [vmem:[%s2789_s3 + $0x160] sm:$0xff] %vm1666_vm0, %v1568_v2  ;;  %v1188_v22 = vadd.f32 %v1187_v1, %v803_v24  ;;  %v1572_v40 = vpop.f32.mrf.mxu0  ;;  %v843_v24 = vadd.f32 %v2813_v8, %v2400_v47 }
 0x245   :  { %v1189_v20 = vpop.f32.mrf.mxu1 }
 0x246   :  { %v1573_v52 = vadd.f32 %v1572_v40, %v1188_v22  ;;  %v1574_v10 = vpop.f32.mrf.mxu0 }
 0x247   :  { %v1192_v55 = vpop.f32.mrf.mxu1 }
 0x248   :  { %1712 = vst.msk [vmem:[%s2789_s3 + $0x168] sm:$0xff] %vm1666_vm0, %v1573_v52  ;;  %v1193_v32 = vadd.f32 %v1192_v55, %v808_v28  ;;  %v1577_v33 = vpop.f32.mrf.mxu0  ;;  %v2814_v28 = vld [vmem:[#allocation13_spill] sm:$0xff] }
 0x249   :  { %v1194_v43 = vpop.f32.mrf.mxu1  ;;  %v848_v52 = vadd.f32 %v2814_v28, %v2400_v47 }
 0x24a   :  { %v1578_v45 = vadd.f32 %v1577_v33, %v1193_v32  ;;  %v1579_v18 = vpop.f32.mrf.mxu0 }
 0x24b   :  { %v1197_v58 = vpop.f32.mrf.mxu1 }
 0x24c   :  { %1713 = vst.msk [vmem:[%s2789_s3 + $0x170] sm:$0xff] %vm1666_vm0, %v1578_v45  ;;  %v1198_v46 = vadd.f32 %v1197_v58, %v813_v25  ;;  %v1582_v17 = vpop.f32.mrf.mxu0  ;;  %v2815_v25 = vld [vmem:[#allocation14_spill] sm:$0xff] }
 0x24d   :  { %v1199_v6 = vpop.f32.mrf.mxu1  ;;  %v853_v45 = vadd.f32 %v2815_v25, %v2400_v47 }
 0x24e   :  { %v1583_v11 = vadd.f32 %v1582_v17, %v1198_v46  ;;  %v1584_v26 = vpop.f32.mrf.mxu0 }
 0x24f   :  { %v1202_v36 = vpop.f32.mrf.mxu1 }
 0x250   :  { %1714 = vst.msk [vmem:[%s2789_s3 + $0x178] sm:$0xff] %vm1666_vm0, %v1583_v11  ;;  %v1203_v39 = vadd.f32 %v1202_v36, %v818_v51  ;;  %v1587_v13 = vpop.f32.mrf.mxu0  ;;  %v2816_v51 = vld [vmem:[#allocation15_spill] sm:$0xff] }
 0x251   :  { %v1204_v41 = vpop.f32.mrf.mxu1  ;;  %v858_v11 = vadd.f32 %v2816_v51, %v2400_v47 }
 0x252   :  { %v1588_v34 = vadd.f32 %v1587_v13, %v1203_v39  ;;  %v1589_v0 = vpop.f32.mrf.mxu0 }
 0x253   :  { %v1207_v38 = vpop.f32.mrf.mxu1 }
 0x254   :  { %1715 = vst.msk [vmem:[%s2789_s3 + $0x180] sm:$0xff] %vm1666_vm0, %v1588_v34  ;;  %v1208_v29 = vadd.f32 %v1207_v38, %v823_v30  ;;  %v1592_v48 = vpop.f32.mrf.mxu0  ;;  %v2817_v30 = vld [vmem:[#allocation16_spill] sm:$0xff] }
 0x255   :  { %v1209_v56 = vpop.f32.mrf.mxu1  ;;  %v863_v34 = vadd.f32 %v2817_v30, %v2400_v47 }
 0x256   :  { %v1593_v42 = vadd.f32 %v1592_v48, %v1208_v29  ;;  %v1594_v62 = vpop.f32.mrf.mxu0 }
 0x257   :  { %v1212_v54 = vpop.f32.mrf.mxu1 }
 0x258   :  { %1716 = vst.msk [vmem:[%s2789_s3 + $0x188] sm:$0xff] %vm1666_vm0, %v1593_v42  ;;  %v1213_v50 = vadd.f32 %v1212_v54, %v828_v44  ;;  %v1597_v59 = vpop.f32.mrf.mxu0  ;;  %v2818_v44 = vld [vmem:[#allocation17_spill] sm:$0xff] }
 0x259   :  { %v1214_v4 = vpop.f32.mrf.mxu1  ;;  %v868_v42 = vadd.f32 %v2818_v44, %v2400_v47 }
 0x25a   :  { %v1598_v49 = vadd.f32 %v1597_v59, %v1213_v50  ;;  %v1599_v37 = vpop.f32.mrf.mxu0 }
 0x25b   :  { %v1217_v15 = vpop.f32.mrf.mxu1 }
 0x25c   :  { %1717 = vst.msk [vmem:[%s2789_s3 + $0x190] sm:$0xff] %vm1666_vm0, %v1598_v49  ;;  %v1218_v23 = vadd.f32 %v1217_v15, %v833_v35  ;;  %v1602_v60 = vpop.f32.mrf.mxu0  ;;  %v2819_v35 = vld [vmem:[#allocation18_spill] sm:$0xff] }
 0x25d   :  { %v1219_v63 = vpop.f32.mrf.mxu1  ;;  %v873_v49 = vadd.f32 %v2819_v35, %v2400_v47 }
 0x25e   :  { %v1603_v57 = vadd.f32 %v1602_v60, %v1218_v23  ;;  %v1604_v61 = vpop.f32.mrf.mxu0 }
 0x25f   :  { %v1222_v5 = vpop.f32.mrf.mxu1 }
 0x260   :  { %1718 = vst.msk [vmem:[%s2789_s3 + $0x198] sm:$0xff] %vm1666_vm0, %v1603_v57  ;;  %v1223_v21 = vadd.f32 %v1222_v5, %v838_v19  ;;  %v1607_v12 = vpop.f32.mrf.mxu0  ;;  %v2820_v19 = vld [vmem:[#allocation19_spill] sm:$0xff] }
 0x261   :  { %v1224_v31 = vpop.f32.mrf.mxu1  ;;  %v878_v57 = vadd.f32 %v2820_v19, %v2400_v47 }
 0x262   :  { %v1608_v2 = vadd.f32 %v1607_v12, %v1223_v21  ;;  %v1609_v9 = vpop.f32.mrf.mxu0 }
 0x263   :  { %v1227_v1 = vpop.f32.mrf.mxu1 }
 0x264   :  { %1719 = vst.msk [vmem:[%s2789_s3 + $0x1a0] sm:$0xff] %vm1666_vm0, %v1608_v2  ;;  %v1228_v22 = vadd.f32 %v1227_v1, %v843_v24  ;;  %v1612_v40 = vpop.f32.mrf.mxu0  ;;  %v2821_v24 = vld [vmem:[#allocation20_spill] sm:$0xff] }
 0x265   :  { %v1229_v20 = vpop.f32.mrf.mxu1  ;;  %v883_v2 = vadd.f32 %v2821_v24, %v2400_v47 }
 0x266   :  { %v1613_v10 = vadd.f32 %v1612_v40, %v1228_v22  ;;  %v1614_v55 = vpop.f32.mrf.mxu0 }
 0x267   :  { %v1232_v32 = vpop.f32.mrf.mxu1 }
 0x268   :  { %1720 = vst.msk [vmem:[%s2789_s3 + $0x1a8] sm:$0xff] %vm1666_vm0, %v1613_v10  ;;  %v1233_v33 = vadd.f32 %v1232_v32, %v848_v52  ;;  %v1617_v43 = vpop.f32.mrf.mxu0  ;;  %v2822_v52 = vld [vmem:[#allocation21_spill] sm:$0xff] }
 0x269   :  { %v1234_v16 = vpop.f32.mrf.mxu1  ;;  %v888_v10 = vadd.f32 %v2822_v52, %v2400_v47 }
 0x26a   :  { %v1618_v18 = vadd.f32 %v1617_v43, %v1233_v33  ;;  %v1619_v58 = vpop.f32.mrf.mxu0 }
 0x26b   :  { %v1237_v46 = vpop.f32.mrf.mxu1 }
 0x26c   :  { %1721 = vst.msk [vmem:[%s2789_s3 + $0x1b0] sm:$0xff] %vm1666_vm0, %v1618_v18  ;;  %v1238_v17 = vadd.f32 %v1237_v46, %v853_v45  ;;  %v1622_v6 = vpop.f32.mrf.mxu0  ;;  %v2823_v45 = vld [vmem:[#allocation22_spill] sm:$0xff] }
 0x26d   :  { %v1239_v27 = vpop.f32.mrf.mxu1  ;;  %v893_v18 = vadd.f32 %v2823_v45, %v2400_v47 }
 0x26e   :  { %v1623_v26 = vadd.f32 %v1622_v6, %v1238_v17  ;;  %v1624_v36 = vpop.f32.mrf.mxu0 }
 0x26f   :  { %v1242_v39 = vpop.f32.mrf.mxu1 }
 0x270   :  { %1722 = vst.msk [vmem:[%s2789_s3 + $0x1b8] sm:$0xff] %vm1666_vm0, %v1623_v26  ;;  %v1243_v13 = vadd.f32 %v1242_v39, %v858_v11  ;;  %v1627_v41 = vpop.f32.mrf.mxu0 }
 0x271   :  { %v1244_v14 = vpop.f32.mrf.mxu1 }
 0x272   :  { %v1628_v0 = vadd.f32 %v1627_v41, %v1243_v13  ;;  %v1629_v38 = vpop.f32.mrf.mxu0 }
 0x273   :  { %v1247_v29 = vpop.f32.mrf.mxu1 }
 0x274   :  { %1723 = vst.msk [vmem:[%s2789_s3 + $0x1c0] sm:$0xff] %vm1666_vm0, %v1628_v0  ;;  %v1248_v48 = vadd.f32 %v1247_v29, %v863_v34  ;;  %v1632_v56 = vpop.f32.mrf.mxu0 }
 0x275   :  { %v1249_v7 = vpop.f32.mrf.mxu1 }
 0x276   :  { %v1633_v62 = vadd.f32 %v1632_v56, %v1248_v48  ;;  %v1634_v54 = vpop.f32.mrf.mxu0 }
 0x277   :  { %v1252_v50 = vpop.f32.mrf.mxu1 }
 0x278   :  { %1724 = vst.msk [vmem:[%s2789_s3 + $0x1c8] sm:$0xff] %vm1666_vm0, %v1633_v62  ;;  %v1253_v59 = vadd.f32 %v1252_v50, %v868_v42  ;;  %v1637_v4 = vpop.f32.mrf.mxu0 }
 0x279   :  { %v1254_v53 = vpop.f32.mrf.mxu1 }
 0x27a   :  { %v1638_v37 = vadd.f32 %v1637_v4, %v1253_v59  ;;  %v1639_v15 = vpop.f32.mrf.mxu0 }
 0x27b   :  { %v1257_v23 = vpop.f32.mrf.mxu1 }
 0x27c   :  { %1725 = vst.msk [vmem:[%s2789_s3 + $0x1d0] sm:$0xff] %vm1666_vm0, %v1638_v37  ;;  %v1258_v60 = vadd.f32 %v1257_v23, %v873_v49  ;;  %v1642_v63 = vpop.f32.mrf.mxu0 }
 0x27d   :  { %v1259_v3 = vpop.f32.mrf.mxu1 }
 0x27e   :  { %v1643_v61 = vadd.f32 %v1642_v63, %v1258_v60  ;;  %v1644_v5 = vpop.f32.mrf.mxu0 }
 0x27f   :  { %v1262_v21 = vpop.f32.mrf.mxu1 }
 0x280   :  { %1726 = vst.msk [vmem:[%s2789_s3 + $0x1d8] sm:$0xff] %vm1666_vm0, %v1643_v61  ;;  %v1263_v12 = vadd.f32 %v1262_v21, %v878_v57  ;;  %v1647_v31 = vpop.f32.mrf.mxu0 }
 0x281   :  { %v1264_v8 = vpop.f32.mrf.mxu1 }
 0x282   :  { %v1648_v9 = vadd.f32 %v1647_v31, %v1263_v12  ;;  %v1649_v1 = vpop.f32.mrf.mxu0 }
 0x283   :  { %v1267_v22 = vpop.f32.mrf.mxu1 }
 0x284   :  { %1727 = vst.msk [vmem:[%s2789_s3 + $0x1e0] sm:$0xff] %vm1666_vm0, %v1648_v9  ;;  %v1268_v40 = vadd.f32 %v1267_v22, %v883_v2  ;;  %v1652_v20 = vpop.f32.mrf.mxu0 }
 0x285   :  { %v1269_v28 = vpop.f32.mrf.mxu1 }
 0x286   :  { %v1653_v55 = vadd.f32 %v1652_v20, %v1268_v40  ;;  %v1654_v32 = vpop.f32.mrf.mxu0 }
 0x287   :  { %v1272_v33 = vpop.f32.mrf.mxu1 }
 0x288   :  { %1728 = vst.msk [vmem:[%s2789_s3 + $0x1e8] sm:$0xff] %vm1666_vm0, %v1653_v55  ;;  %v1273_v43 = vadd.f32 %v1272_v33, %v888_v10  ;;  %v1657_v16 = vpop.f32.mrf.mxu0 }
 0x289   :  { %v1274_v25 = vpop.f32.mrf.mxu1 }
 0x28a   :  { %v1658_v58 = vadd.f32 %v1657_v16, %v1273_v43  ;;  %v1659_v46 = vpop.f32.mrf.mxu0 }
 0x28b   :  { %v1277_v17 = vpop.f32.mrf.mxu1 }
 0x28c   :  { %1729 = vst.msk [vmem:[%s2789_s3 + $0x1f0] sm:$0xff] %vm1666_vm0, %v1658_v58  ;;  %v1278_v6 = vadd.f32 %v1277_v17, %v893_v18  ;;  %v1662_v27 = vpop.f32.mrf.mxu0 }
 0x28d   :  { %v1279_v51 = vpop.f32.mrf.mxu1 }
 0x28e   :  { %v1663_v11 = vadd.f32 %v1662_v27, %v1278_v6  ;;  %v1664_v26 = vpop.f32.mrf.mxu0 }
 0x290   :  { %1730 = vst.msk [vmem:[%s2789_s3 + $0x1f8] sm:$0xff] %vm1666_vm0, %v1663_v11 }
 0x291   :  { %1735 = vsyncpa [#allocation4], 1 }

</bundles_post_ra>
